<compile_context>
chip_gen: v5e
topology: v5e:2x2
jax: 0.10.0
libtpu: 0.0.40
codegen_flags: <defaults>
</compile_context>

<pallas_src>
import functools

import jax
import jax.numpy as jnp
from jax import lax
from jax.experimental import pallas as pl
from jax.experimental.pallas import tpu as pltpu
from jax.scipy.special import gammaln


def _round_up(x, m):
    return ((x + m - 1) // m) * m


def plan_padding(T_text, T_feats, target_block_bytes=2_500_000):
    """Lane-dense text padding + feats tile so each streaming grid step moves
    ~2.5 MB of prior(bf16)+out(f32) HBM traffic (amortizes per-step overhead)."""
    T_text_pad = _round_up(max(T_text, 1), 128)
    T_feats8 = _round_up(max(T_feats, 1), 8)
    target = max(256, _round_up(target_block_bytes // (6 * T_text_pad), 8))
    n_tiles = max(1, -(-T_feats8 // target))
    tile_f = _round_up(-(-T_feats8 // n_tiles), 8)
    T_feats_pad = tile_f * n_tiles
    return T_text_pad, T_feats_pad, tile_f


def _conv3(x, w_ref, k0, bias, rows):
    """Conv1d(kernel=3, padding=1), channels-last; bf16 MXU operands, f32 acc.

    x: (T, Cin) f32; w_ref[k0+k]: (Cin, Cout) bf16; bias: (1, Cout) f32;
    rows: (T, 1) int32 iota used to zero the rows wrapped in by the rolls.
    """
    T = x.shape[0]
    xm1 = jnp.where(rows >= 1, pltpu.roll(x, shift=1, axis=0), 0.0)          # x[t-1]
    xp1 = jnp.where(rows <= T - 2, pltpu.roll(x, shift=T - 1, axis=0), 0.0)  # x[t+1]
    acc = jnp.dot(xm1.astype(jnp.bfloat16), w_ref[k0],
                  preferred_element_type=jnp.float32)
    acc = acc + jnp.dot(x.astype(jnp.bfloat16), w_ref[k0 + 1],
                        preferred_element_type=jnp.float32)
    acc = acc + jnp.dot(xp1.astype(jnp.bfloat16), w_ref[k0 + 2],
                        preferred_element_type=jnp.float32)
    return acc + bias


def _branch_kernel(t_text, t_feats,
                   text_ref, feats_ref,
                   wt_ref, bt_ref, wf1_ref, wf23_ref, bf_ref,
                   t2t_ref, tsq_ref, f_ref, fsq_ref):
    T_text_pad = text_ref.shape[1]
    T_feats_pad = feats_ref.shape[1]

    text = text_ref[0].astype(jnp.float32)    # (T_text_pad, adim)
    feats = feats_ref[0].astype(jnp.float32)  # (T_feats_pad, odim)

    # ---- text branch: relu(conv3) -> conv1 ----
    rt = lax.broadcasted_iota(jnp.int32, (T_text_pad, 1), 0)
    t = jnp.maximum(_conv3(text, wt_ref, 0, bt_ref[0:1, :], rt), 0.0)
    t = jnp.dot(t.astype(jnp.bfloat16), wt_ref[3],
                preferred_element_type=jnp.float32) + bt_ref[1:2, :]

    # ---- feats branch: relu(conv3) -> relu(conv3) -> conv1 ----
    rf = lax.broadcasted_iota(jnp.int32, (T_feats_pad, 1), 0)
    f = jnp.maximum(_conv3(feats, wf1_ref, 0, bf_ref[0:1, :], rf), 0.0)
    if T_feats_pad != t_feats:
        # padded rows must look like the reference Conv1d zero padding at the
        # real sequence boundary before they feed the next k=3 conv
        f = jnp.where(rf < t_feats, f, 0.0)
    f = jnp.maximum(_conv3(f, wf23_ref, 0, bf_ref[1:2, :], rf), 0.0)
    f = jnp.dot(f.astype(jnp.bfloat16), wf23_ref[3],
                preferred_element_type=jnp.float32) + bf_ref[2:3, :]

    # Round to bf16 once and compute the norms from the rounded values so that
    # d2 = ||f||^2 + ||t||^2 - 2 f.t stays >= 0 up to accumulation error.
    f_b = f.astype(jnp.bfloat16)
    f_ref[0] = f_b
    f_r = f_b.astype(jnp.float32)
    fsq_ref[0] = jnp.sum(f_r * f_r, axis=-1, keepdims=True)

    t_r = t.astype(jnp.bfloat16).astype(jnp.float32)
    tT = jnp.transpose(t_r)                        # (adim, T_text_pad), once/batch
    t2t_ref[0] = (2.0 * tT).astype(jnp.bfloat16)   # pre-scaled: no -2*cross mult
    tsq = jnp.sum(tT * tT, axis=0, keepdims=True)  # lane-dense (1, T_text_pad)
    if T_text_pad != t_text:
        # bake the lane-padding mask into ||t||^2 (large finite value, not inf,
        # so sqrt/exp never see inf - inf)
        col = lax.broadcasted_iota(jnp.int32, (1, T_text_pad), 1)
        tsq = jnp.where(col < t_text, tsq, 1e30)
    tsq_ref[0] = tsq


def _score_kernel(t2t_ref, tsq_ref, f_ref, fsq_ref, prior_ref, out_ref):
    # ||f - t||^2 = ||f||^2 + ||t||^2 - (f . 2t); t is stored pre-transposed and
    # pre-scaled, so the cross term is a single plain MXU matmul per tile.
    cross2 = jnp.dot(f_ref[0], t2t_ref[0], preferred_element_type=jnp.float32)
    d2 = jnp.maximum(fsq_ref[0] + tsq_ref[0] - cross2, 0.0)
    score = -jnp.sqrt(d2)
    m = jnp.max(score, axis=-1, keepdims=True)
    lse = jnp.log(jnp.sum(jnp.exp(score - m), axis=-1, keepdims=True))
    out_ref[0] = (score - (m + lse)) + prior_ref[0].astype(jnp.float32)


def alignment_module(text, feats, prior, params, crop=True):
    """Forward of AlignmentModule (x_masks=None path).

    prior: ideally produced by generate_prior(..., pad_shape) already padded to
    (B, T_feats_pad, T_text_pad) bf16; otherwise it is padded/cast here.
    Returns (B, T_feats, T_text) f32 (or the padded array if crop=False).
    """
    B, T_text, adim = text.shape
    _, T_feats, odim = feats.shape
    (wt1, bt1, wt2, bt2, wf1, bf1, wf2, bf2, wf3, bf3) = params

    T_text_pad, T_feats_pad, tile_f = plan_padding(T_text, T_feats)
    n_tiles = T_feats_pad // tile_f
    bf16 = jnp.bfloat16

    # inputs: bf16 in HBM (halves input DMA; they feed bf16 MXU matmuls anyway)
    text_p = jnp.pad(text.astype(bf16), ((0, 0), (0, T_text_pad - T_text), (0, 0)))
    feats_p = jnp.pad(feats.astype(bf16), ((0, 0), (0, T_feats_pad - T_feats), (0, 0)))

    if prior.shape != (B, T_feats_pad, T_text_pad) or prior.dtype != bf16:
        # fallback only: prefer producing the prior padded + bf16 at the source
        prior = jnp.pad(prior.astype(bf16),
                        ((0, 0), (0, T_feats_pad - prior.shape[1]),
                         (0, T_text_pad - prior.shape[2])))

    # pack the 10 small parameters into 5 blobs (fewer DMA descriptors/buffers)
    wt_blob = jnp.concatenate([wt1, wt2[None]], axis=0).astype(bf16)        # (4, adim, adim)
    bt_blob = jnp.concatenate([bt1, bt2], axis=0).astype(jnp.float32)       # (2, adim)
    wf1_blob = wf1.astype(bf16)                                             # (3, odim, adim)
    wf23_blob = jnp.concatenate([wf2, wf3[None]], axis=0).astype(bf16)      # (4, adim, adim)
    bf_blob = jnp.concatenate([bf1, bf2, bf3], axis=0).astype(jnp.float32)  # (3, adim)

    # ---- stage 1: conv branches, once per batch element ----------------------
    k1_bytes = (4 * T_text_pad * adim * 2 + 4 * T_feats_pad * odim * 2
                + 4 * adim * T_text_pad * 2 + 4 * T_feats_pad * adim * 2
                + 12 * T_feats_pad * adim * 4 + 8 * T_text_pad * adim * 4
                + 4 * (8 * adim * adim + 3 * odim * adim) * 2
                + (4 << 20))
    t2t, tsq, f_bf, fsq = pl.pallas_call(
        functools.partial(_branch_kernel, T_text, T_feats),
        out_shape=(
            jax.ShapeDtypeStruct((B, adim, T_text_pad), bf16),        # 2*t, transposed
            jax.ShapeDtypeStruct((B, 1, T_text_pad), jnp.float32),    # ||t||^2 (+mask)
            jax.ShapeDtypeStruct((B, T_feats_pad, adim), bf16),       # f
            jax.ShapeDtypeStruct((B, T_feats_pad, 1), jnp.float32),   # ||f||^2
        ),
        grid_spec=pltpu.PrefetchScalarGridSpec(
            num_scalar_prefetch=0,
            grid=(B,),
            in_specs=[
                pl.BlockSpec((1, T_text_pad, adim), lambda b: (b, 0, 0)),
                pl.BlockSpec((1, T_feats_pad, odim), lambda b: (b, 0, 0)),
                pl.BlockSpec(wt_blob.shape, lambda b: (0, 0, 0)),
                pl.BlockSpec(bt_blob.shape, lambda b: (0, 0)),
                pl.BlockSpec(wf1_blob.shape, lambda b: (0, 0, 0)),
                pl.BlockSpec(wf23_blob.shape, lambda b: (0, 0, 0)),
                pl.BlockSpec(bf_blob.shape, lambda b: (0, 0)),
            ],
            out_specs=(
                pl.BlockSpec((1, adim, T_text_pad), lambda b: (b, 0, 0)),
                pl.BlockSpec((1, 1, T_text_pad), lambda b: (b, 0, 0)),
                pl.BlockSpec((1, T_feats_pad, adim), lambda b: (b, 0, 0)),
                pl.BlockSpec((1, T_feats_pad, 1), lambda b: (b, 0, 0)),
            ),
        ),
        compiler_params=pltpu.CompilerParams(
            dimension_semantics=("parallel",),
            vmem_limit_bytes=int(min(max(k1_bytes, 32 << 20), 56 << 20)),
        ),
    )(text_p, feats_p, wt_blob, bt_blob, wf1_blob, wf23_blob, bf_blob)

    # ---- stage 2: streaming distance + log_softmax + prior (fully parallel) --
    blk = tile_f * T_text_pad
    k2_bytes = (2 * (blk * 2 + blk * 4 + tile_f * adim * 2 + tile_f * 128 * 4
                     + adim * T_text_pad * 2 + 8 * T_text_pad * 4)
                + 8 * blk * 4 + (4 << 20))
    out = pl.pallas_call(
        _score_kernel,
        out_shape=jax.ShapeDtypeStruct((B, T_feats_pad, T_text_pad), jnp.float32),
        grid_spec=pltpu.PrefetchScalarGridSpec(
            num_scalar_prefetch=0,
            grid=(B, n_tiles),
            in_specs=[
                pl.BlockSpec((1, adim, T_text_pad), lambda b, j: (b, 0, 0)),
                pl.BlockSpec((1, 1, T_text_pad), lambda b, j: (b, 0, 0)),
                pl.BlockSpec((1, tile_f, adim), lambda b, j: (b, j, 0)),
                pl.BlockSpec((1, tile_f, 1), lambda b, j: (b, j, 0)),
                pl.BlockSpec((1, tile_f, T_text_pad), lambda b, j: (b, j, 0)),
            ],
            out_specs=pl.BlockSpec((1, tile_f, T_text_pad), lambda b, j: (b, j, 0)),
        ),
        compiler_params=pltpu.CompilerParams(
            dimension_semantics=("parallel", "parallel"),
            vmem_limit_bytes=int(min(max(k2_bytes, 32 << 20), 56 << 20)),
        ),
    )(t2t, tsq, f_bf, fsq, prior)

    if crop and (T_feats_pad != T_feats or T_text_pad != T_text):
        # TODO(synk): callers that can index lazily / fuse the crop downstream
        # should pass crop=False to avoid this extra HBM pass over the output.
        out = out[:, :T_feats, :T_text]
    return out


# ----------------- beta-binomial prior (plain-JAX glue) -----------------
def _betabinom_logpmf(k, n, a, b):
    # log C(n,k) + betaln(k+a, n-k+b) - betaln(a, b)
    return (gammaln(n + 1.0) - gammaln(k + 1.0) - gammaln(n - k + 1.0)
            + gammaln(k + a) + gammaln(n - k + b) - gammaln(n + a + b)
            - (gammaln(a) + gammaln(b) - gammaln(a + b)))


def generate_prior(text_lengths, feats_lengths, pad_shape, w=1.0,
                   dtype=jnp.bfloat16):
    """Beta-binomial prior, produced already padded to (B, T_feats_pad, T_text_pad)
    and in bf16 so the kernel wrapper does no extra pad/cast HBM pass.
    Entries beyond the per-utterance lengths are -inf (as in the reference)."""
    # TODO(synk): the module's host-side caching dict (_cache) is a no-op here; omitted.
    B = len(text_lengths)
    T_feats_pad, T_text_pad = pad_shape
    prior = jnp.full((B, T_feats_pad, T_text_pad), -jnp.inf, dtype=jnp.float32)
    for bidx in range(B):
        T = int(feats_lengths[bidx])
        N = int(text_lengths[bidx])
        alpha = w * jnp.arange(1, T + 1, dtype=jnp.float32)      # (T,)
        beta = w * (float(T) - alpha + 1.0)                      # (T,)
        k = jnp.arange(N, dtype=jnp.float32)[:, None]            # (N,1)
        prob = _betabinom_logpmf(k, float(N), alpha[None, :], beta[None, :])  # (N,T)
        prior = prior.at[bidx, :T, :N].set(prob.T)               # (T,N)
    return prior.astype(dtype)


if __name__ == "__main__":
    B, T_text, T_feats, adim, odim = 2, 8, 16, 32, 24
    key = jax.random.PRNGKey(0)
    ks = jax.random.split(key, 12)

    text = jax.random.normal(ks[0], (B, T_text, adim), jnp.float32)
    feats = jax.random.normal(ks[1], (B, T_feats, odim), jnp.float32)
    text_lengths = [8, 6]
    feats_lengths = [16, 12]

    def conv_w(k, kern, cin, cout):
        s = 1.0 / (cin * kern) ** 0.5
        return jax.random.uniform(k, (kern, cin, cout), jnp.float32, -s, s)

    def conv_b(k, kern, cin, cout):
        s = 1.0 / (cin * kern) ** 0.5
        return jax.random.uniform(k, (1, cout), jnp.float32, -s, s)

    # Conv1d weight (Cout, Cin, K) in torch -> laid out here as (K, Cin, Cout)
    wt1 = conv_w(ks[2], 3, adim, adim); bt1 = conv_b(ks[3], 3, adim, adim)
    wt2 = conv_w(ks[4], 1, adim, adim)[0]; bt2 = conv_b(ks[5], 1, adim, adim)
    wf1 = conv_w(ks[6], 3, odim, adim); bf1 = conv_b(ks[7], 3, odim, adim)
    wf2 = conv_w(ks[8], 3, adim, adim); bf2 = conv_b(ks[9], 3, adim, adim)
    wf3 = conv_w(ks[10], 1, adim, adim)[0]; bf3 = conv_b(ks[11], 1, adim, adim)
    params = (wt1, bt1, wt2, bt2, wf1, bf1, wf2, bf2, wf3, bf3)

    # prior is generated already padded + bf16 (no extra pad/cast pass in wrapper)
    T_text_pad, T_feats_pad, _ = plan_padding(T_text, T_feats)
    prior = generate_prior(text_lengths, feats_lengths, (T_feats_pad, T_text_pad))

    log_p_attn = alignment_module(text, feats, prior, params)
    jax.block_until_ready(log_p_attn)

    assert log_p_attn.shape == (B, T_feats, T_text)
    # batch 0 uses full lengths -> its prior (and hence output) must be finite
    assert bool(jnp.isfinite(log_p_attn[0]).all())
    # internal consistency: (log_p_attn - prior) must be a log_softmax over text
    prior0 = prior[0, :T_feats, :T_text].astype(jnp.float32)
    row_sums = jnp.exp(log_p_attn[0] - prior0).sum(-1)
    assert bool(jnp.allclose(row_sums, 1.0, atol=1e-2))
    print("KERNEL_OK")
</pallas_src>

<mosaic_0001>
module attributes {stable_mosaic.version = 11 : i64} {
  func.func @_branch_kernel(%arg0: i32, %arg1: memref<1x128x32xbf16, #tpu.memory_space<vmem>>, %arg2: memref<1x16x24xbf16, #tpu.memory_space<vmem>>, %arg3: memref<4x32x32xbf16, #tpu.memory_space<vmem>>, %arg4: memref<2x32xf32, #tpu.memory_space<vmem>>, %arg5: memref<3x24x32xbf16, #tpu.memory_space<vmem>>, %arg6: memref<4x32x32xbf16, #tpu.memory_space<vmem>>, %arg7: memref<3x32xf32, #tpu.memory_space<vmem>>, %arg8: memref<1x32x128xbf16, #tpu.memory_space<vmem>>, %arg9: memref<1x1x128xf32, #tpu.memory_space<vmem>>, %arg10: memref<1x16x32xbf16, #tpu.memory_space<vmem>>, %arg11: memref<1x16x1xf32, #tpu.memory_space<vmem>>) attributes {dimension_semantics = [#tpu.dimension_semantics<parallel>], iteration_bounds = array<i64: 2>, scalar_prefetch = 0 : i64, scratch_operands = 0 : i64, tpu.core_type = #tpu.core_type<tc>, window_params = [{transform_indices = @transform_0, window_bounds = array<i64: 1, 128, 32>}, {transform_indices = @transform_1, window_bounds = array<i64: 1, 16, 24>}, {pipeline_mode = #tpu.pipeline_mode<synchronous>, transform_indices = @transform_2, window_bounds = array<i64: 4, 32, 32>}, {pipeline_mode = #tpu.pipeline_mode<synchronous>, transform_indices = @transform_3, window_bounds = array<i64: 2, 32>}, {pipeline_mode = #tpu.pipeline_mode<synchronous>, transform_indices = @transform_4, window_bounds = array<i64: 3, 24, 32>}, {pipeline_mode = #tpu.pipeline_mode<synchronous>, transform_indices = @transform_5, window_bounds = array<i64: 4, 32, 32>}, {pipeline_mode = #tpu.pipeline_mode<synchronous>, transform_indices = @transform_6, window_bounds = array<i64: 3, 32>}, {transform_indices = @transform_7, window_bounds = array<i64: 1, 32, 128>}, {transform_indices = @transform_8, window_bounds = array<i64: 1, 1, 128>}, {transform_indices = @transform_9, window_bounds = array<i64: 1, 16, 32>}, {transform_indices = @transform_10, window_bounds = array<i64: 1, 16, 1>}]} {
    %c0 = arith.constant 0 : index
    %c0_0 = arith.constant 0 : index
    %c0_1 = arith.constant 0 : index
    %0 = vector.load %arg1[%c0, %c0_0, %c0_1] : memref<1x128x32xbf16, #tpu.memory_space<vmem>>, vector<1x128x32xbf16>
    %1 = vector.shape_cast %0 : vector<1x128x32xbf16> to vector<128x32xbf16>
    %2 = arith.extf %1 : vector<128x32xbf16> to vector<128x32xf32>
    %c0_2 = arith.constant 0 : index
    %c0_3 = arith.constant 0 : index
    %c0_4 = arith.constant 0 : index
    %3 = vector.load %arg2[%c0_2, %c0_3, %c0_4] : memref<1x16x24xbf16, #tpu.memory_space<vmem>>, vector<1x16x24xbf16>
    %4 = vector.shape_cast %3 : vector<1x16x24xbf16> to vector<16x24xbf16>
    %5 = arith.extf %4 : vector<16x24xbf16> to vector<16x24xf32>
    %6 = tpu.iota {dimensions = array<i32: 0>} : vector<128x1xi32>
    %c0_5 = arith.constant 0 : index
    %c0_6 = arith.constant 0 : index
    %7 = vector.load %arg4[%c0_5, %c0_6] : memref<2x32xf32, #tpu.memory_space<vmem>>, vector<1x32xf32>
    %c1_i32 = arith.constant 1 : i32
    %8 = vector.broadcast %c1_i32 : i32 to vector<128x1xi32>
    %9 = arith.cmpi sge, %6, %8 : vector<128x1xi32>
    %c1_i32_7 = arith.constant 1 : i32
    %10 = tpu.dynamic_rotate %2 by %c1_i32_7 dim 0 : vector<128x32xf32>, i32 -> vector<128x32xf32>
    %cst = arith.constant 0.000000e+00 : f32
    %11 = vector.shape_cast %9 : vector<128x1xi1> to vector<128x1xi1>
    %12 = vector.broadcast %11 : vector<128x1xi1> to vector<128x32xi1>
    %13 = vector.broadcast %cst : f32 to vector<128x32xf32>
    %14 = arith.select %12, %10, %13 : vector<128x32xi1>, vector<128x32xf32>
    %c126_i32 = arith.constant 126 : i32
    %15 = vector.broadcast %c126_i32 : i32 to vector<128x1xi32>
    %16 = arith.cmpi sle, %6, %15 : vector<128x1xi32>
    %c127_i32 = arith.constant 127 : i32
    %17 = tpu.dynamic_rotate %2 by %c127_i32 dim 0 : vector<128x32xf32>, i32 -> vector<128x32xf32>
    %cst_8 = arith.constant 0.000000e+00 : f32
    %18 = vector.shape_cast %16 : vector<128x1xi1> to vector<128x1xi1>
    %19 = vector.broadcast %18 : vector<128x1xi1> to vector<128x32xi1>
    %20 = vector.broadcast %cst_8 : f32 to vector<128x32xf32>
    %21 = arith.select %19, %17, %20 : vector<128x32xi1>, vector<128x32xf32>
    %22 = arith.truncf %14 : vector<128x32xf32> to vector<128x32xbf16>
    %c0_9 = arith.constant 0 : index
    %c0_10 = arith.constant 0 : index
    %c0_11 = arith.constant 0 : index
    %23 = vector.load %arg3[%c0_9, %c0_10, %c0_11] : memref<4x32x32xbf16, #tpu.memory_space<vmem>>, vector<1x32x32xbf16>
    %24 = vector.shape_cast %23 : vector<1x32x32xbf16> to vector<32x32xbf16>
    %cst_12 = arith.constant dense<0.000000e+00> : vector<128x32xf32>
    %25 = tpu.matmul %22, %24, %cst_12 {dimension_numbers = #tpu.dot_dimension_numbers<[1], [0], [0], [1], [0, 0, 1, 1], [], []>} : vector<128x32xbf16>, vector<32x32xbf16>, vector<128x32xf32> -> vector<128x32xf32>
    %26 = arith.truncf %2 : vector<128x32xf32> to vector<128x32xbf16>
    %c1 = arith.constant 1 : index
    %c0_13 = arith.constant 0 : index
    %c0_14 = arith.constant 0 : index
    %27 = vector.load %arg3[%c1, %c0_13, %c0_14] : memref<4x32x32xbf16, #tpu.memory_space<vmem>>, vector<1x32x32xbf16>
    %28 = vector.shape_cast %27 : vector<1x32x32xbf16> to vector<32x32xbf16>
    %cst_15 = arith.constant dense<0.000000e+00> : vector<128x32xf32>
    %29 = tpu.matmul %26, %28, %cst_15 {dimension_numbers = #tpu.dot_dimension_numbers<[1], [0], [0], [1], [0, 0, 1, 1], [], []>} : vector<128x32xbf16>, vector<32x32xbf16>, vector<128x32xf32> -> vector<128x32xf32>
    %30 = arith.addf %25, %29 : vector<128x32xf32>
    %31 = arith.truncf %21 : vector<128x32xf32> to vector<128x32xbf16>
    %c2 = arith.constant 2 : index
    %c0_16 = arith.constant 0 : index
    %c0_17 = arith.constant 0 : index
    %32 = vector.load %arg3[%c2, %c0_16, %c0_17] : memref<4x32x32xbf16, #tpu.memory_space<vmem>>, vector<1x32x32xbf16>
    %33 = vector.shape_cast %32 : vector<1x32x32xbf16> to vector<32x32xbf16>
    %cst_18 = arith.constant dense<0.000000e+00> : vector<128x32xf32>
    %34 = tpu.matmul %31, %33, %cst_18 {dimension_numbers = #tpu.dot_dimension_numbers<[1], [0], [0], [1], [0, 0, 1, 1], [], []>} : vector<128x32xbf16>, vector<32x32xbf16>, vector<128x32xf32> -> vector<128x32xf32>
    %35 = arith.addf %30, %34 : vector<128x32xf32>
    %36 = vector.broadcast %7 : vector<1x32xf32> to vector<128x32xf32>
    %37 = arith.addf %35, %36 : vector<128x32xf32>
    %cst_19 = arith.constant 0.000000e+00 : f32
    %38 = vector.broadcast %cst_19 : f32 to vector<128x32xf32>
    %39 = arith.maximumf %37, %38 : vector<128x32xf32>
    %40 = arith.truncf %39 : vector<128x32xf32> to vector<128x32xbf16>
    %c3 = arith.constant 3 : index
    %c0_20 = arith.constant 0 : index
    %c0_21 = arith.constant 0 : index
    %41 = vector.load %arg3[%c3, %c0_20, %c0_21] : memref<4x32x32xbf16, #tpu.memory_space<vmem>>, vector<1x32x32xbf16>
    %42 = vector.shape_cast %41 : vector<1x32x32xbf16> to vector<32x32xbf16>
    %cst_22 = arith.constant dense<0.000000e+00> : vector<128x32xf32>
    %43 = tpu.matmul %40, %42, %cst_22 {dimension_numbers = #tpu.dot_dimension_numbers<[1], [0], [0], [1], [0, 0, 1, 1], [], []>} : vector<128x32xbf16>, vector<32x32xbf16>, vector<128x32xf32> -> vector<128x32xf32>
    %c1_23 = arith.constant 1 : index
    %c0_24 = arith.constant 0 : index
    %44 = vector.load %arg4[%c1_23, %c0_24] : memref<2x32xf32, #tpu.memory_space<vmem>>, vector<1x32xf32>
    %45 = vector.broadcast %44 : vector<1x32xf32> to vector<128x32xf32>
    %46 = arith.addf %43, %45 : vector<128x32xf32>
    %47 = tpu.iota {dimensions = array<i32: 0>} : vector<16x1xi32>
    %c0_25 = arith.constant 0 : index
    %c0_26 = arith.constant 0 : index
    %48 = vector.load %arg7[%c0_25, %c0_26] : memref<3x32xf32, #tpu.memory_space<vmem>>, vector<1x32xf32>
    %c1_i32_27 = arith.constant 1 : i32
    %49 = vector.broadcast %c1_i32_27 : i32 to vector<16x1xi32>
    %50 = arith.cmpi sge, %47, %49 : vector<16x1xi32>
    %c1_i32_28 = arith.constant 1 : i32
    %51 = tpu.dynamic_rotate %5 by %c1_i32_28 dim 0 : vector<16x24xf32>, i32 -> vector<16x24xf32>
    %cst_29 = arith.constant 0.000000e+00 : f32
    %52 = vector.shape_cast %50 : vector<16x1xi1> to vector<16x1xi1>
    %53 = vector.broadcast %52 : vector<16x1xi1> to vector<16x24xi1>
    %54 = vector.broadcast %cst_29 : f32 to vector<16x24xf32>
    %55 = arith.select %53, %51, %54 : vector<16x24xi1>, vector<16x24xf32>
    %c14_i32 = arith.constant 14 : i32
    %56 = vector.broadcast %c14_i32 : i32 to vector<16x1xi32>
    %57 = arith.cmpi sle, %47, %56 : vector<16x1xi32>
    %c15_i32 = arith.constant 15 : i32
    %58 = tpu.dynamic_rotate %5 by %c15_i32 dim 0 : vector<16x24xf32>, i32 -> vector<16x24xf32>
    %cst_30 = arith.constant 0.000000e+00 : f32
    %59 = vector.shape_cast %57 : vector<16x1xi1> to vector<16x1xi1>
    %60 = vector.broadcast %59 : vector<16x1xi1> to vector<16x24xi1>
    %61 = vector.broadcast %cst_30 : f32 to vector<16x24xf32>
    %62 = arith.select %60, %58, %61 : vector<16x24xi1>, vector<16x24xf32>
    %63 = arith.truncf %55 : vector<16x24xf32> to vector<16x24xbf16>
    %c0_31 = arith.constant 0 : index
    %c0_32 = arith.constant 0 : index
    %c0_33 = arith.constant 0 : index
    %64 = vector.load %arg5[%c0_31, %c0_32, %c0_33] : memref<3x24x32xbf16, #tpu.memory_space<vmem>>, vector<1x24x32xbf16>
    %65 = vector.shape_cast %64 : vector<1x24x32xbf16> to vector<24x32xbf16>
    %cst_34 = arith.constant dense<0.000000e+00> : vector<16x32xf32>
    %66 = tpu.matmul %63, %65, %cst_34 {dimension_numbers = #tpu.dot_dimension_numbers<[1], [0], [0], [1], [0, 0, 1, 1], [], []>} : vector<16x24xbf16>, vector<24x32xbf16>, vector<16x32xf32> -> vector<16x32xf32>
    %67 = arith.truncf %5 : vector<16x24xf32> to vector<16x24xbf16>
    %c1_35 = arith.constant 1 : index
    %c0_36 = arith.constant 0 : index
    %c0_37 = arith.constant 0 : index
    %68 = vector.load %arg5[%c1_35, %c0_36, %c0_37] : memref<3x24x32xbf16, #tpu.memory_space<vmem>>, vector<1x24x32xbf16>
    %69 = vector.shape_cast %68 : vector<1x24x32xbf16> to vector<24x32xbf16>
    %cst_38 = arith.constant dense<0.000000e+00> : vector<16x32xf32>
    %70 = tpu.matmul %67, %69, %cst_38 {dimension_numbers = #tpu.dot_dimension_numbers<[1], [0], [0], [1], [0, 0, 1, 1], [], []>} : vector<16x24xbf16>, vector<24x32xbf16>, vector<16x32xf32> -> vector<16x32xf32>
    %71 = arith.addf %66, %70 : vector<16x32xf32>
    %72 = arith.truncf %62 : vector<16x24xf32> to vector<16x24xbf16>
    %c2_39 = arith.constant 2 : index
    %c0_40 = arith.constant 0 : index
    %c0_41 = arith.constant 0 : index
    %73 = vector.load %arg5[%c2_39, %c0_40, %c0_41] : memref<3x24x32xbf16, #tpu.memory_space<vmem>>, vector<1x24x32xbf16>
    %74 = vector.shape_cast %73 : vector<1x24x32xbf16> to vector<24x32xbf16>
    %cst_42 = arith.constant dense<0.000000e+00> : vector<16x32xf32>
    %75 = tpu.matmul %72, %74, %cst_42 {dimension_numbers = #tpu.dot_dimension_numbers<[1], [0], [0], [1], [0, 0, 1, 1], [], []>} : vector<16x24xbf16>, vector<24x32xbf16>, vector<16x32xf32> -> vector<16x32xf32>
    %76 = arith.addf %71, %75 : vector<16x32xf32>
    %77 = vector.broadcast %48 : vector<1x32xf32> to vector<16x32xf32>
    %78 = arith.addf %76, %77 : vector<16x32xf32>
    %cst_43 = arith.constant 0.000000e+00 : f32
    %79 = vector.broadcast %cst_43 : f32 to vector<16x32xf32>
    %80 = arith.maximumf %78, %79 : vector<16x32xf32>
    %c1_44 = arith.constant 1 : index
    %c0_45 = arith.constant 0 : index
    %81 = vector.load %arg7[%c1_44, %c0_45] : memref<3x32xf32, #tpu.memory_space<vmem>>, vector<1x32xf32>
    %c1_i32_46 = arith.constant 1 : i32
    %82 = vector.broadcast %c1_i32_46 : i32 to vector<16x1xi32>
    %83 = arith.cmpi sge, %47, %82 : vector<16x1xi32>
    %c1_i32_47 = arith.constant 1 : i32
    %84 = tpu.dynamic_rotate %80 by %c1_i32_47 dim 0 : vector<16x32xf32>, i32 -> vector<16x32xf32>
    %cst_48 = arith.constant 0.000000e+00 : f32
    %85 = vector.shape_cast %83 : vector<16x1xi1> to vector<16x1xi1>
    %86 = vector.broadcast %85 : vector<16x1xi1> to vector<16x32xi1>
    %87 = vector.broadcast %cst_48 : f32 to vector<16x32xf32>
    %88 = arith.select %86, %84, %87 : vector<16x32xi1>, vector<16x32xf32>
    %c14_i32_49 = arith.constant 14 : i32
    %89 = vector.broadcast %c14_i32_49 : i32 to vector<16x1xi32>
    %90 = arith.cmpi sle, %47, %89 : vector<16x1xi32>
    %c15_i32_50 = arith.constant 15 : i32
    %91 = tpu.dynamic_rotate %80 by %c15_i32_50 dim 0 : vector<16x32xf32>, i32 -> vector<16x32xf32>
    %cst_51 = arith.constant 0.000000e+00 : f32
    %92 = vector.shape_cast %90 : vector<16x1xi1> to vector<16x1xi1>
    %93 = vector.broadcast %92 : vector<16x1xi1> to vector<16x32xi1>
    %94 = vector.broadcast %cst_51 : f32 to vector<16x32xf32>
    %95 = arith.select %93, %91, %94 : vector<16x32xi1>, vector<16x32xf32>
    %96 = arith.truncf %88 : vector<16x32xf32> to vector<16x32xbf16>
    %c0_52 = arith.constant 0 : index
    %c0_53 = arith.constant 0 : index
    %c0_54 = arith.constant 0 : index
    %97 = vector.load %arg6[%c0_52, %c0_53, %c0_54] : memref<4x32x32xbf16, #tpu.memory_space<vmem>>, vector<1x32x32xbf16>
    %98 = vector.shape_cast %97 : vector<1x32x32xbf16> to vector<32x32xbf16>
    %cst_55 = arith.constant dense<0.000000e+00> : vector<16x32xf32>
    %99 = tpu.matmul %96, %98, %cst_55 {dimension_numbers = #tpu.dot_dimension_numbers<[1], [0], [0], [1], [0, 0, 1, 1], [], []>} : vector<16x32xbf16>, vector<32x32xbf16>, vector<16x32xf32> -> vector<16x32xf32>
    %100 = arith.truncf %80 : vector<16x32xf32> to vector<16x32xbf16>
    %c1_56 = arith.constant 1 : index
    %c0_57 = arith.constant 0 : index
    %c0_58 = arith.constant 0 : index
    %101 = vector.load %arg6[%c1_56, %c0_57, %c0_58] : memref<4x32x32xbf16, #tpu.memory_space<vmem>>, vector<1x32x32xbf16>
    %102 = vector.shape_cast %101 : vector<1x32x32xbf16> to vector<32x32xbf16>
    %cst_59 = arith.constant dense<0.000000e+00> : vector<16x32xf32>
    %103 = tpu.matmul %100, %102, %cst_59 {dimension_numbers = #tpu.dot_dimension_numbers<[1], [0], [0], [1], [0, 0, 1, 1], [], []>} : vector<16x32xbf16>, vector<32x32xbf16>, vector<16x32xf32> -> vector<16x32xf32>
    %104 = arith.addf %99, %103 : vector<16x32xf32>
    %105 = arith.truncf %95 : vector<16x32xf32> to vector<16x32xbf16>
    %c2_60 = arith.constant 2 : index
    %c0_61 = arith.constant 0 : index
    %c0_62 = arith.constant 0 : index
    %106 = vector.load %arg6[%c2_60, %c0_61, %c0_62] : memref<4x32x32xbf16, #tpu.memory_space<vmem>>, vector<1x32x32xbf16>
    %107 = vector.shape_cast %106 : vector<1x32x32xbf16> to vector<32x32xbf16>
    %cst_63 = arith.constant dense<0.000000e+00> : vector<16x32xf32>
    %108 = tpu.matmul %105, %107, %cst_63 {dimension_numbers = #tpu.dot_dimension_numbers<[1], [0], [0], [1], [0, 0, 1, 1], [], []>} : vector<16x32xbf16>, vector<32x32xbf16>, vector<16x32xf32> -> vector<16x32xf32>
    %109 = arith.addf %104, %108 : vector<16x32xf32>
    %110 = vector.broadcast %81 : vector<1x32xf32> to vector<16x32xf32>
    %111 = arith.addf %109, %110 : vector<16x32xf32>
    %cst_64 = arith.constant 0.000000e+00 : f32
    %112 = vector.broadcast %cst_64 : f32 to vector<16x32xf32>
    %113 = arith.maximumf %111, %112 : vector<16x32xf32>
    %114 = arith.truncf %113 : vector<16x32xf32> to vector<16x32xbf16>
    %c3_65 = arith.constant 3 : index
    %c0_66 = arith.constant 0 : index
    %c0_67 = arith.constant 0 : index
    %115 = vector.load %arg6[%c3_65, %c0_66, %c0_67] : memref<4x32x32xbf16, #tpu.memory_space<vmem>>, vector<1x32x32xbf16>
    %116 = vector.shape_cast %115 : vector<1x32x32xbf16> to vector<32x32xbf16>
    %cst_68 = arith.constant dense<0.000000e+00> : vector<16x32xf32>
    %117 = tpu.matmul %114, %116, %cst_68 {dimension_numbers = #tpu.dot_dimension_numbers<[1], [0], [0], [1], [0, 0, 1, 1], [], []>} : vector<16x32xbf16>, vector<32x32xbf16>, vector<16x32xf32> -> vector<16x32xf32>
    %c2_69 = arith.constant 2 : index
    %c0_70 = arith.constant 0 : index
    %118 = vector.load %arg7[%c2_69, %c0_70] : memref<3x32xf32, #tpu.memory_space<vmem>>, vector<1x32xf32>
    %119 = vector.broadcast %118 : vector<1x32xf32> to vector<16x32xf32>
    %120 = arith.addf %117, %119 : vector<16x32xf32>
    %121 = arith.truncf %120 : vector<16x32xf32> to vector<16x32xbf16>
    %c0_71 = arith.constant 0 : index
    %c0_72 = arith.constant 0 : index
    %c0_73 = arith.constant 0 : index
    %122 = vector.load %arg10[%c0_71, %c0_72, %c0_73] : memref<1x16x32xbf16, #tpu.memory_space<vmem>>, vector<1x16x32xbf16>
    %123 = vector.shape_cast %122 : vector<1x16x32xbf16> to vector<16x32xbf16>
    %124 = vector.shape_cast %121 : vector<16x32xbf16> to vector<1x16x32xbf16>
    tpu.vector_store %arg10[%c0_71, %c0_72, %c0_73], %124 {strides = array<i32>} : memref<1x16x32xbf16, #tpu.memory_space<vmem>>, vector<1x16x32xbf16>,
    %125 = arith.extf %121 : vector<16x32xbf16> to vector<16x32xf32>
    %126 = arith.mulf %125, %125 : vector<16x32xf32>
    %cst_74 = arith.constant dense<0.000000e+00> : vector<16xf32>
    %127 = vector.multi_reduction <add>, %126, %cst_74 [1] : vector<16x32xf32> to vector<16xf32>
    %128 = vector.shape_cast %127 : vector<16xf32> to vector<16x1xf32>
    %c0_75 = arith.constant 0 : index
    %c0_76 = arith.constant 0 : index
    %c0_77 = arith.constant 0 : index
    %129 = vector.load %arg11[%c0_75, %c0_76, %c0_77] : memref<1x16x1xf32, #tpu.memory_space<vmem>>, vector<1x16x1xf32>
    %130 = vector.shape_cast %129 : vector<1x16x1xf32> to vector<16x1xf32>
    %131 = vector.shape_cast %128 : vector<16x1xf32> to vector<1x16x1xf32>
    tpu.vector_store %arg11[%c0_75, %c0_76, %c0_77], %131 {strides = array<i32>} : memref<1x16x1xf32, #tpu.memory_space<vmem>>, vector<1x16x1xf32>,
    %132 = arith.truncf %46 : vector<128x32xf32> to vector<128x32xbf16>
    %133 = arith.extf %132 : vector<128x32xbf16> to vector<128x32xf32>
    %134 = tpu.transpose %133, [1, 0] : vector<128x32xf32> -> vector<32x128xf32>
    %cst_78 = arith.constant 2.000000e+00 : f32
    %135 = vector.broadcast %cst_78 : f32 to vector<32x128xf32>
    %136 = arith.mulf %135, %134 : vector<32x128xf32>
    %137 = arith.truncf %136 : vector<32x128xf32> to vector<32x128xbf16>
    %c0_79 = arith.constant 0 : index
    %c0_80 = arith.constant 0 : index
    %c0_81 = arith.constant 0 : index
    %138 = vector.load %arg8[%c0_79, %c0_80, %c0_81] : memref<1x32x128xbf16, #tpu.memory_space<vmem>>, vector<1x32x128xbf16>
    %139 = vector.shape_cast %138 : vector<1x32x128xbf16> to vector<32x128xbf16>
    %140 = vector.shape_cast %137 : vector<32x128xbf16> to vector<1x32x128xbf16>
    tpu.vector_store %arg8[%c0_79, %c0_80, %c0_81], %140 {strides = array<i32>} : memref<1x32x128xbf16, #tpu.memory_space<vmem>>, vector<1x32x128xbf16>,
    %141 = arith.mulf %134, %134 : vector<32x128xf32>
    %cst_82 = arith.constant dense<0.000000e+00> : vector<128xf32>
    %142 = vector.multi_reduction <add>, %141, %cst_82 [0] : vector<32x128xf32> to vector<128xf32>
    %143 = vector.shape_cast %142 : vector<128xf32> to vector<1x128xf32>
    %144 = tpu.iota {dimensions = array<i32: 1>} : vector<1x128xi32>
    %c8_i32 = arith.constant 8 : i32
    %145 = vector.broadcast %c8_i32 : i32 to vector<1x128xi32>
    %146 = arith.cmpi slt, %144, %145 : vector<1x128xi32>
    %cst_83 = arith.constant 1.000000e+30 : f32
    %147 = vector.broadcast %cst_83 : f32 to vector<1x128xf32>
    %148 = arith.select %146, %143, %147 : vector<1x128xi1>, vector<1x128xf32>
    %c0_84 = arith.constant 0 : index
    %c0_85 = arith.constant 0 : index
    %c0_86 = arith.constant 0 : index
    %149 = vector.load %arg9[%c0_84, %c0_85, %c0_86] : memref<1x1x128xf32, #tpu.memory_space<vmem>>, vector<1x1x128xf32>
    %150 = vector.shape_cast %149 : vector<1x1x128xf32> to vector<1x128xf32>
    %151 = vector.shape_cast %148 : vector<1x128xf32> to vector<1x1x128xf32>
    tpu.vector_store %arg9[%c0_84, %c0_85, %c0_86], %151 {strides = array<i32>} : memref<1x1x128xf32, #tpu.memory_space<vmem>>, vector<1x1x128xf32>,
    return
  }
  func.func @transform_0(%arg0: i32) -> (i32, i32, i32) {
    %c0_i32 = arith.constant 0 : i32
    %c0_i32_0 = arith.constant 0 : i32
    %c0_i32_1 = arith.constant 0 : i32
    return %arg0, %c0_i32, %c0_i32_0 : i32, i32, i32
  }
  func.func @transform_1(%arg0: i32) -> (i32, i32, i32) {
    %c0_i32 = arith.constant 0 : i32
    %c0_i32_0 = arith.constant 0 : i32
    %c0_i32_1 = arith.constant 0 : i32
    return %arg0, %c0_i32, %c0_i32_0 : i32, i32, i32
  }
  func.func @transform_2(%arg0: i32) -> (i32, i32, i32) {
    %c0_i32 = arith.constant 0 : i32
    %c0_i32_0 = arith.constant 0 : i32
    %c0_i32_1 = arith.constant 0 : i32
    %c0_i32_2 = arith.constant 0 : i32
    return %c0_i32, %c0_i32_0, %c0_i32_1 : i32, i32, i32
  }
  func.func @transform_3(%arg0: i32) -> (i32, i32) {
    %c0_i32 = arith.constant 0 : i32
    %c0_i32_0 = arith.constant 0 : i32
    %c0_i32_1 = arith.constant 0 : i32
    return %c0_i32, %c0_i32_0 : i32, i32
  }
  func.func @transform_4(%arg0: i32) -> (i32, i32, i32) {
    %c0_i32 = arith.constant 0 : i32
    %c0_i32_0 = arith.constant 0 : i32
    %c0_i32_1 = arith.constant 0 : i32
    %c0_i32_2 = arith.constant 0 : i32
    return %c0_i32, %c0_i32_0, %c0_i32_1 : i32, i32, i32
  }
  func.func @transform_5(%arg0: i32) -> (i32, i32, i32) {
    %c0_i32 = arith.constant 0 : i32
    %c0_i32_0 = arith.constant 0 : i32
    %c0_i32_1 = arith.constant 0 : i32
    %c0_i32_2 = arith.constant 0 : i32
    return %c0_i32, %c0_i32_0, %c0_i32_1 : i32, i32, i32
  }
  func.func @transform_6(%arg0: i32) -> (i32, i32) {
    %c0_i32 = arith.constant 0 : i32
    %c0_i32_0 = arith.constant 0 : i32
    %c0_i32_1 = arith.constant 0 : i32
    return %c0_i32, %c0_i32_0 : i32, i32
  }
  func.func @transform_7(%arg0: i32) -> (i32, i32, i32) {
    %c0_i32 = arith.constant 0 : i32
    %c0_i32_0 = arith.constant 0 : i32
    %c0_i32_1 = arith.constant 0 : i32
    return %arg0, %c0_i32, %c0_i32_0 : i32, i32, i32
  }
  func.func @transform_8(%arg0: i32) -> (i32, i32, i32) {
    %c0_i32 = arith.constant 0 : i32
    %c0_i32_0 = arith.constant 0 : i32
    %c0_i32_1 = arith.constant 0 : i32
    return %arg0, %c0_i32, %c0_i32_0 : i32, i32, i32
  }
  func.func @transform_9(%arg0: i32) -> (i32, i32, i32) {
    %c0_i32 = arith.constant 0 : i32
    %c0_i32_0 = arith.constant 0 : i32
    %c0_i32_1 = arith.constant 0 : i32
    return %arg0, %c0_i32, %c0_i32_0 : i32, i32, i32
  }
  func.func @transform_10(%arg0: i32) -> (i32, i32, i32) {
    %c0_i32 = arith.constant 0 : i32
    %c0_i32_0 = arith.constant 0 : i32
    %c0_i32_1 = arith.constant 0 : i32
    return %arg0, %c0_i32, %c0_i32_0 : i32, i32, i32
  }
}

</mosaic_0001>

<bundles_post_ra>
// kernel: tpu_custom_call.1
= control target key start
LH: loop header
LB: loop body
LE: loop exit
PB: predicated region body
PF: predicated region fallthrough
CT: control target
= control target key end

     0   :  { %s2755_s0 = inlined_call_operand.vmem [shape: bf16[2,128,32], index: 0, kind: input, shape index: {}]   ;;  %s2756_s1 = inlined_call_operand.vmem [shape: bf16[2,16,24], index: 1, kind: input, shape index: {}]   ;;  %s2757_s2 = inlined_call_operand.vmem [shape: bf16[4,32,32], index: 2, kind: input, shape index: {}]   ;;  %s2758_s3 = inlined_call_operand.vmem [shape: f32[2,32], index: 3, kind: input, shape index: {}]   ;;  %s2759_s4 = inlined_call_operand.hbm [shape: bf16[3,24,32], index: 4, kind: input, shape index: {}]   ;;  %s2760_s5 = inlined_call_operand.vmem [shape: bf16[4,32,32], index: 5, kind: input, shape index: {}]   ;;  %s2761_s6 = inlined_call_operand.vmem [shape: f32[3,32], index: 6, kind: input, shape index: {}]   ;;  %s2762_s7 = inlined_call_operand.hbm [shape: bf16[2,32,128], index: 7, kind: output, shape index: {0}]   ;;  %s2763_s8 = inlined_call_operand.hbm [shape: f32[2,1,128], index: 8, kind: output, shape index: {1}]   ;;  %s2764_s9 = inlined_call_operand.hbm [shape: bf16[2,16,32], index: 9, kind: output, shape index: {2}]   ;;  %s2765_s10 = inlined_call_operand.vmem [shape: f32[2,16,1], index: 10, kind: output, shape index: {3}]  }
   0x1   :  { %2769 = sst [smem:[#allocation13_spill]] %s2755_s0 }
   0x2   :  { %2770 = sst [smem:[#allocation14_spill]] %s2756_s1 }
   0x3   :  { %2771 = sst [smem:[#allocation15_spill]] %s2757_s2 }
   0x4   :  { %2772 = sst [smem:[#allocation16_spill]] %s2759_s4 }
   0x5   :  { %16 = vsyncpa [#allocation3], 0 }
   0x6   :  { %17 = vsyncpa [#allocation4], 0 }
   0x7   :  { %19 = vsyncpa [#allocation4 + $0x1], 0 }
   0x8   :  { %20 = vsyncpa [#allocation7], 0 }
   0x9   :  { %22 = vsyncpa [#allocation7 + $0x1], 0  ;;  %s2306_s13 = smov 0   ;;  %s2308_s14 = smov 0  }
   0xa   :  { %s2310_s15 = smov 0   ;;  %s2312_s16 = smov 0  }
   0xb LB: > { %s2327_s17 = sadd.s32 4294967295, %s2244_s16   ;;  %s2766_s18 = sadd.s32 4294967294, %s2244_s16   ;;  %s2244_s16 = sphi %s2312_s16, %s2787_s16   ;;  %s2240_s15 = sphi %s2310_s15, %s2786_s15   ;;  %s2236_s14 = sphi %s2308_s14, %s2785_s14   ;;  %s2232_s13 = sphi %s2306_s13, %s2784_s13  }
   0xc   : > { %s2331_s19 = sadd.s32 1, %s2244_s16   ;;  %s192_s20 = sadd.s32 1, %s2240_s15 }
   0xd   : > { %s189_s21 = ssub.s32 %s2244_s16, %s2331_s19  ;;  %p202_p0 = scmp.ne.s32.totalorder %s2240_s15, %s2236_s14 }
   0xe   : > { %p190_p1 = scmp.eq.s32.totalorder %s189_s21, 0  ;;  %p203_p2 = scmp.eq.s32.totalorder %s2327_s17, 1 }
   0xf   : > { %p208_p3 = scmp.ne.s32.totalorder %s2236_s14, %s2232_s13  ;;  %p209_p4 = scmp.eq.s32.totalorder %s2766_s18, 1 }
  0x10   : > { %s2344_s22 = scalar_select %p190_p1, %s2240_s15, %s192_s20  }
  0x11   : > { %p2346_p5 = por %p203_p2, %p202_p0  ;;  %p2350_p6 = por %p209_p4, %p208_p3 }
  0x12   : > { %2773 = sst [smem:[#allocation12_spill]] %s2344_s22  ;;  %p1779_p7 = scmp.ge.s32.totalorder %s2244_s16, 1 }
  0x13   : > { %p294_p8 = scmp.lt.s32.totalorder %s2244_s16, 3  ;;  %p2043_p9 = scmp.eq.s32.totalorder %s2327_s17, 0 }
  0x14   : > { %s2776_s4 = sld [smem:[#allocation16_spill]]  ;;  %s2246_s28 = smov [#allocation2]  }
  0x15   : > { %p295_p10 = pnand %p1779_p7, %p294_p8  ;;  %s313_s29 = sshll.u32 %s2246_s28, 4  ;;  %s314_s29 = int_to_ptr.vmem [resolvable:$true] %s313_s29 }
  0x16   : > { %s2247_s30 = smov 64   ;;  %s2248_s11 = smov 4  }
  0x17   : > { %p2029_p11 = pneg %p295_p10  ;;  %351 = sbr.rel (%p295_p10) target bundleno = 739 (0x2e3), region = 48 }
  0x19   : > { %p2030_p12 = pnand %p2043_p9, %p2029_p11 }
  0x1a   : > { %s311_s27 = sshll.u32 %s2776_s4, 4  ;;  %s312_s27 = int_to_ptr.hbm [resolvable:$true] %s311_s27 }
  0x1b   : > { %2032 = dma.hbm_to_vmem [thread:$0]  (!%p2030_p12), %s312_s27, 576, %s314_s29, [#allocation3], %s2247_s30, %s2247_s30, %s2248_s11  }
  0x1c   : > { %2219 = dma.done.wait (%p2043_p9), [#allocation3], 576  }
  0x1d   : > { %2221 = vsyncadd (%p2043_p9), [#allocation3], 4294966720  ;;  %p409_p13 = scmp.lt.s32.totalorder %s2327_s17, 1  ;;  %v461_v0 = vlaneseq  ;;  %s2777_s0 = sld [smem:[#allocation13_spill]]  ;;  %vm742_vm0 = vcmask 261120   ;;  %vm1193_vm2 = vcmask 1043456  }
  0x1e   : > { %s2778_s2 = sld [smem:[#allocation15_spill]]  ;;  %v1244_v14 = vld [vmem:[#allocation2 + $0x20] sm:$0xf]  ;;  %v1174_v15 = vld [vmem:[#allocation2 + $0x14] sm:$0xf]  ;;  %vm1189_vm7 = vcmask 195584  }
  0x1f   : > { %s2368_s12 = scalar_select %p409_p13, %s2327_s17, 1  ;;  %v2372_v1 = vshrl.u32 %v461_v0, 7  ;;  %v1250_v17 = vunpack.c.l.b16 %v1244_v14  ;;  %v1185_v18 = vunpack.c.l.b16 %v1174_v15  ;;  %v1170_v19 = vld [vmem:[#allocation2 + $0x8] sm:$0xf]  ;;  %vm1444_vm8 = vcmask 257024  }
  0x20   : > { %v1216_v31 = vunpack.c.l.b16 %v1170_v19  ;;  %s2779_s1 = sld [smem:[#allocation14_spill]]  ;;  %s2006_s22 = sshll.u32 %s2327_s17, 4 }
  0x21   : > { %s1975_s20 = sshll.u32 %s2368_s12, 6  ;;  %vm479_vm1 = vcmp.ge.s32.totalorder %v2372_v1, 1  ;;  %vm511_vm3 = vcmp.lt.s32.totalorder %v2372_v1, 1  ;;  %vm608_vm4 = vcmp.lt.s32.totalorder %v2372_v1, 7  ;;  %v1252_v27 = vpack.c.b16 %v1250_v17, %v1250_v17  ;;  %s1976_s4 = sshll.u32 %s2368_s12, 3 }
  0x22   : > { %v1187_v28 = vpack.c.b16 %v1185_v18, %v1185_v18  ;;  %v1218_v39 = vpack.c.b16 %v1216_v31, %v1216_v31  ;;  %s1572_s11 = scalar_lea.hbm %s2762_s7, %s2006_s22  ;;  %s2138_s30 = scalar_lea.hbm %s2762_s7, 32 }
  0x23   : > { %s2377_s26 = scalar_lea.vmem %s2777_s0, %s1975_s20  ;;  %v1258_v35 = vsel %vm1193_vm2, %v1252_v27, 0 }
  0x24   : > { %v1990_v2 = vld [vmem:[%s2778_s2 + $0x18] sm:$0xff]  ;;  %v1988_v3 = vld [vmem:[%s2778_s2 + $0x8] sm:$0xff]  ;;  %v1989_v5 = vld [vmem:[%s2778_s2 + $0x10] sm:$0xff]  ;;  %v1195_v38 = vsel %vm1193_vm2, %v1187_v28, 0  ;;  %v1224_v41 = vsel %vm1193_vm2, %v1218_v39, 0 }
  0x25   : > { %v1992_v4 = vld [vmem:[%s2778_s2 + $0x28] sm:$0xff]  ;;  %v1987_v6 = vld [vmem:[%s2778_s2] sm:$0xff]  ;;  %773 = vmatpush.bf16.msra.mxu0 %v1990_v2  ;;  %858 = vmatpush.bf16.msra.mxu1 %v1988_v3  ;;  %v2399_v9 = vld [vmem:[%s2377_s26 + $0x38] sm:$0xff]  }
  0x26   : > { %v1991_v7 = vld [vmem:[%s2778_s2 + $0x20] sm:$0xff]  ;;  %956 = vmatpush.bf16.msra.mxu2 %v1992_v4  ;;  %v456_v12 = vunpack.c.h.bf16 %v2399_v9  ;;  %v427_v13 = vld [vmem:[%s2377_s26 + $0x8] sm:$0xff]   ;;  %v429_v40 = vld [vmem:[%s2377_s26 + $0x10] sm:$0xff]   ;;  %s2519_s28 = scalar_lea.vmem %s2779_s1, %s1976_s4 }
  0x27   : > { %v425_v8 = vld [vmem:[%s2377_s26] sm:$0xff]   ;;  %v443_v16 = vunpack.c.l.bf16 %v427_v13  ;;  %v444_v42 = vunpack.c.h.bf16 %v427_v13  ;;  %v445_v43 = vunpack.c.l.bf16 %v429_v40  ;;  %v1979_v52 = vld [vmem:[%s2377_s26 + $0x8] sm:$0xff]  ;;  %v431_v55 = vld [vmem:[%s2377_s26 + $0x18] sm:$0xff]   ;;  %v446_v56 = vunpack.c.h.bf16 %v429_v40 }
  0x28   : > { %v441_v10 = vunpack.c.l.bf16 %v425_v8  ;;  %v442_v11 = vunpack.c.h.bf16 %v425_v8  ;;  %v1978_v20 = vld [vmem:[%s2377_s26] sm:$0xff]  ;;  %v2409_v23 = vrot.slane %v456_v12, 7  ;;  %v447_v57 = vunpack.c.l.bf16 %v431_v55  ;;  %v1980_v4 = vld [vmem:[%s2377_s26 + $0x10] sm:$0xff]  ;;  %v1997_v8 = vld [vmem:[#allocation2 + $0x18] sm:$0xff] }
  0x29   : > { %774 = vmatpush.bf16.msra.mxu0 %v1989_v5  ;;  %859 = vmatpush.bf16.msra.mxu1 %v1987_v6  ;;  %v594_v26 = vrot.slane %v443_v16, 1  ;;  %v497_v44 = vrot.slane %v443_v16, 7  ;;  %v498_v45 = vrot.slane %v444_v42, 7  ;;  %v595_v46 = vrot.slane %v444_v42, 1  ;;  %v435_v28 = vld [vmem:[%s2377_s26 + $0x28] sm:$0xff]   ;;  %v1982_v39 = vld [vmem:[%s2377_s26 + $0x20] sm:$0xff] }
  0x2a   : > { %v495_v21 = vrot.slane %v441_v10, 7  ;;  %v496_v22 = vrot.slane %v442_v11, 7  ;;  %v2411_v24 = vrot.slane %v441_v10, 1  ;;  %v593_v25 = vrot.slane %v442_v11, 1  ;;  %957 = vmatpush.bf16.msra.mxu2 %v1991_v7  ;;  %v433_v7 = vld [vmem:[%s2377_s26 + $0x20] sm:$0xff]   ;;  %v1996_v10 = vld [vmem:[#allocation2 + $0xc] sm:$0xff] }
  0x2b   : > { %v596_v47 = vrot.slane %v445_v43, 1  ;;  %v524_v48 = vsel %vm511_vm3, %v497_v44, %v498_v45  ;;  %v621_v51 = vsel %vm608_vm4, %v594_v26, %v595_v46  ;;  %v499_v58 = vrot.slane %v445_v43, 7  ;;  %v1995_v11 = vld [vmem:[#allocation2] sm:$0xff]  ;;  %v437_v42 = vld [vmem:[%s2377_s26 + $0x30] sm:$0xff]  }
  0x2c   : > { %v526_v29 = vsel %vm511_vm3, %v495_v21, %v496_v22  ;;  %v527_v30 = vsel %vm511_vm3, %v2409_v23, %v495_v21  ;;  %v622_v33 = vsel %vm608_vm4, %v593_v25, %v594_v26  ;;  %v623_v34 = vsel %vm608_vm4, %v2411_v24, %v593_v25  ;;  %1836 = vmatmul.msk.bf16.vlgmr.msra.gmra.mxu0 %vm742_vm0, %v1978_v20  ;;  %v1981_v25 = vld [vmem:[%s2377_s26 + $0x18] sm:$0xff] }
  0x2d   : > { %v560_v32 = vsel %vm479_vm1, %v527_v30, 0.0  ;;  %v901_v37 = vpack.c.bf16 %v622_v33, %v623_v34  ;;  %1203 = vmatpush.bf16.msrb.mxu0 %v1195_v38  ;;  %1232 = vmatpush.bf16.msrb.mxu1 %v1224_v41  ;;  %v525_v49 = vsel %vm511_vm3, %v496_v22, %v497_v44  ;;  %v620_v50 = vsel %vm608_vm4, %v595_v46, %v596_v47 }
  0x2e   : > { %v673_v36 = vpack.c.bf16 %v526_v29, %v560_v32  ;;  %1266 = vmatpush.bf16.msrb.mxu2 %v1258_v35  ;;  %v674_v53 = vpack.c.bf16 %v524_v48, %v525_v49  ;;  %v902_v54 = vpack.c.bf16 %v620_v50, %v621_v51  ;;  %v500_v59 = vrot.slane %v446_v56, 7 }
  0x2f   : > { %1872 = vmatmul.msk.bf16.vlgmr.msra.gmra.mxu2 %vm742_vm0, %v901_v37  ;;  %v597_v60 = vrot.slane %v446_v56, 1  ;;  %v598_v61 = vrot.slane %v447_v57, 1  ;;  %v523_v63 = vsel %vm511_vm3, %v498_v45, %v499_v58  ;;  %v448_v13 = vunpack.c.h.bf16 %v431_v55 }
  0x30   : > { %1852 = vmatmul.msk.bf16.vlgmr.msra.gmra.mxu1 %vm742_vm0, %v673_v36  ;;  %v522_v62 = vsel %vm511_vm3, %v499_v58, %v500_v59  ;;  %v449_v14 = vunpack.c.l.bf16 %v433_v7  ;;  %v501_v15 = vrot.slane %v447_v57, 7  ;;  %v450_v29 = vunpack.c.h.bf16 %v433_v7 }
  0x31   : > { %v618_v2 = vsel %vm608_vm4, %v597_v60, %v598_v61  ;;  %v619_v3 = vsel %vm608_vm4, %v596_v47, %v597_v60  ;;  %v675_v5 = vpack.c.bf16 %v522_v62, %v523_v63  ;;  %1204 = vmatpush.bf16.msrb.mxu0 %v1996_v10  ;;  %1233 = vmatpush.bf16.msrb.mxu1 %v1995_v11  ;;  %v502_v16 = vrot.slane %v448_v13, 7 }
  0x32   : > { %v903_v6 = vpack.c.bf16 %v618_v2, %v619_v3  ;;  %1267 = vmatpush.bf16.msrb.mxu2 %v1997_v8  ;;  %v599_v17 = vrot.slane %v448_v13, 1  ;;  %v600_v18 = vrot.slane %v449_v14, 1  ;;  %v521_v20 = vsel %vm511_vm3, %v500_v59, %v501_v15 }
  0x33   : > { %v520_v19 = vsel %vm511_vm3, %v501_v15, %v502_v16  ;;  %v451_v30 = vunpack.c.l.bf16 %v435_v28  ;;  %v503_v31 = vrot.slane %v449_v14, 7  ;;  %v504_v32 = vrot.slane %v450_v29, 7  ;;  %v1985_v15 = vld [vmem:[%s2377_s26 + $0x38] sm:$0xff] }
  0x34   : > { %v616_v21 = vsel %vm608_vm4, %v599_v17, %v600_v18  ;;  %v617_v22 = vsel %vm608_vm4, %v598_v61, %v599_v17  ;;  %v676_v26 = vpack.c.bf16 %v520_v19, %v521_v20  ;;  %v601_v33 = vrot.slane %v450_v29, 1  ;;  %v1993_v20 = vld [vmem:[%s2778_s2 + $0x30] sm:$0xff] }
  0x35   : > { %v904_v27 = vpack.c.bf16 %v616_v21, %v617_v22  ;;  %v602_v34 = vrot.slane %v451_v30, 1  ;;  %v518_v35 = vsel %vm511_vm3, %v503_v31, %v504_v32  ;;  %v519_v36 = vsel %vm511_vm3, %v502_v16, %v503_v31  ;;  %v457_v16 = vld [vmem:[%s2519_s28] sm:$0xff]  }
  0x36   : > { %v615_v38 = vsel %vm608_vm4, %v600_v18, %v601_v33  ;;  %v677_v40 = vpack.c.bf16 %v518_v35, %v519_v36  ;;  %v452_v43 = vunpack.c.h.bf16 %v435_v28  ;;  %v453_v44 = vunpack.c.l.bf16 %v437_v42  ;;  %v1986_v35 = vld [vmem:[%s2519_s28] sm:$0xff] }
  0x37   : > { %v614_v37 = vsel %vm608_vm4, %v601_v33, %v602_v34  ;;  %v505_v45 = vrot.slane %v451_v30, 7  ;;  %v454_v56 = vunpack.c.h.bf16 %v437_v42  ;;  %v455_v57 = vunpack.c.l.bf16 %v2399_v9  ;;  %v2001_v30 = vld [vmem:[%s2760_s5 + $0x18] sm:$0xff] }
  0x38   : > { %v905_v41 = vpack.c.bf16 %v614_v37, %v615_v38  ;;  %v506_v46 = vrot.slane %v452_v43, 7  ;;  %v603_v47 = vrot.slane %v452_v43, 1  ;;  %v604_v48 = vrot.slane %v453_v44, 1 }
  0x39   : > { %v517_v50 = vsel %vm511_vm3, %v504_v32, %v505_v45  ;;  %v507_v58 = vrot.slane %v453_v44, 7  ;;  %v508_v59 = vrot.slane %v454_v56, 7  ;;  %v605_v60 = vrot.slane %v454_v56, 1 }
  0x3a   : > { %v516_v49 = vsel %vm511_vm3, %v505_v45, %v506_v46  ;;  %v612_v51 = vsel %vm608_vm4, %v603_v47, %v604_v48  ;;  %v606_v61 = vrot.slane %v455_v57, 1  ;;  %v477_v7 = vadd.s32 120, %v2372_v1  ;;  %v2562_v45 = vld [vmem:[%s2758_s3] ss:$0 sm:$0xff] }
  0x3b   : > { %v514_v62 = vsel %vm511_vm3, %v507_v58, %v508_v59  ;;  %v515_v63 = vsel %vm511_vm3, %v506_v46, %v507_v58  ;;  %v611_v3 = vsel %vm608_vm4, %v604_v48, %v605_v60  ;;  %v607_v8 = vrot.slane %v456_v12, 1 }
  0x3c   : > { %1837 = vmatmul.msk.bf16.gmra.mxu0 %vm742_vm0, %v1979_v52  ;;  %v613_v52 = vsel %vm608_vm4, %v602_v34, %v603_v47  ;;  %v610_v2 = vsel %vm608_vm4, %v605_v60, %v606_v61  ;;  %v509_v10 = vrot.slane %v455_v57, 7  ;;  %vm591_vm5 = vcmp.le.s32.totalorder %v477_v7, 126 }
  0x3d   : > { %v906_v55 = vpack.c.bf16 %v612_v51, %v613_v52  ;;  %v624_v11 = vsel %vm608_vm4, %v607_v8, %v2411_v24  ;;  %v609_v12 = vsel %vm608_vm4, %v606_v61, %v607_v8  ;;  %v1994_v24 = vld [vmem:[%s2778_s2 + $0x38] sm:$0xff]  ;;  %v459_v19 = vunpack.c.l.bf16 %v457_v16 }
  0x3e   : > { %v512_v13 = vsel %vm511_vm3, %v509_v10, %v2409_v23  ;;  %v513_v9 = vsel %vm511_vm3, %v508_v59, %v509_v10  ;;  %v672_v14 = vsel %vm591_vm5, %v624_v11, 0.0  ;;  %1105 = vmatpush.bf16.msra.mxu3 %v1994_v24  ;;  %v460_v23 = vunpack.c.h.bf16 %v457_v16 }
  0x3f   : > { %1873 = vmatmul.msk.bf16.gmra.mxu2 %vm742_vm0, %v902_v54  ;;  %v678_v54 = vpack.c.bf16 %v516_v49, %v517_v50  ;;  %v680_v17 = vpack.c.bf16 %v512_v13, %v513_v9  ;;  %v908_v18 = vpack.c.bf16 %v672_v14, %v609_v12  ;;  %v1149_v21 = vrot.slane %v459_v19, 7 }
  0x40   : > { %1853 = vmatmul.msk.bf16.gmra.mxu1 %vm742_vm0, %v674_v53  ;;  %v1983_v53 = vld [vmem:[%s2377_s26 + $0x28] sm:$0xff]  ;;  %v1150_v22 = vrot.slane %v460_v23, 7 }
  0x42   : > { %1106 = vmatpush.bf16.msra.mxu3 %v1993_v20  ;;  %v1152_v28 = vsel %vm511_vm3, %v1150_v22, %v1149_v21  ;;  %v1151_v31 = vsel %vm511_vm3, %v1149_v21, %v1150_v22 }
  0x43   : > { %v1153_v32 = vsel %vm479_vm1, %v1152_v28, 0.0 }
  0x44   : > { %v1167_v37 = vpack.c.bf16 %v1151_v31, %v1153_v32 }
  0x46   : > { %1326 = vmatpush.bf16.msrb.mxu3 %v2001_v30  ;;  %v2000_v30 = vld [vmem:[%s2760_s5 + $0x10] sm:$0xff] }
  0x4a   : > { %1327 = vmatpush.bf16.msrb.mxu3 %v2000_v30  ;;  %v1998_v30 = vld [vmem:[%s2760_s5] sm:$0xff] }
  0x4c   : > { %1838 = vmatmul.msk.bf16.gmra.mxu0 %vm742_vm0, %v1980_v4  ;;  %v1984_v4 = vld [vmem:[%s2377_s26 + $0x30] sm:$0xff]  ;;  %s2653_s26 = sand.u32 1, %s2236_s14  }
  0x4d   : > { %s1784_s21 = sshll.u32 %s2653_s26, 4  ;;  %s1785_s4 = sshll.u32 %s2653_s26, 3 }
  0x4e   : > { %s388_s18 = scalar_lea.vmem [#allocation5], %s1784_s21  ;;  %s2661_s28 = scalar_lea.vmem [#allocation8], %s1785_s4 }
  0x4f   : > { %1874 = vmatmul.msk.bf16.gmra.mxu2 %vm742_vm0, %v903_v6  ;;  %v907_v6 = vpack.c.bf16 %v610_v2, %v611_v3  ;;  %s1573_s20 = sshll.u32 %s388_s18, 4  ;;  %s1575_s21 = sshll.u32 %s1572_s11, 4  ;;  %s1574_s20 = int_to_ptr.vmem [resolvable:$true] %s1573_s20  ;;  %s1576_s21 = int_to_ptr.hbm [resolvable:$true] %s1575_s21 }
  0x50   : > { %1854 = vmatmul.msk.bf16.gmra.mxu1 %vm742_vm0, %v675_v5  ;;  %v679_v5 = vpack.c.bf16 %v514_v62, %v515_v63  ;;  %s1547_s25 = scalar_lea.sflag [#allocation4], %s2653_s26  ;;  %s2132_s27 = sshra.s32 %s1576_s21, 4  ;;  %s2133_s27 = int_to_ptr.hbm [resolvable:$true] %s2132_s27 }
  0x51   : > { %s2134_s4 = scalar_lea.hbm %s2133_s27, 16  ;;  %p2139_p3 = scmp.lt.s32.totalorder %s2133_s27, %s2762_s7 }
  0x52   : > { %p2135_p0 = scmp.ne.s32.totalorder %s2133_s27, %s2134_s4  ;;  %p2140_p4 = scmp.lt.s32.totalorder %s2138_s30, %s2134_s4 }
  0x54   : > { %p2136_p1 = pnand %p2135_p0, %p2346_p5  ;;  %p2141_p7 = por %p2140_p4, %p2139_p3 }
  0x56   : > { %p2137_p2 = pneg %p2136_p1 }
  0x58   : > { %p2142_p8 = pnand %p2141_p7, %p2137_p2 }
  0x5c   : > { %1839 = vmatmul.msk.bf16.gmra.mxu0 %vm742_vm0, %v1981_v25  ;;  %v2540_v25 = vadd.s32 8, %v2372_v1 }
  0x5e   : > { %vm1156_vm6 = vcmp.le.s32.totalorder %v2540_v25, 14 }
  0x5f   : > { %1875 = vmatmul.msk.bf16.gmra.mxu2 %vm742_vm0, %v904_v27  ;;  %v1158_v27 = vrot.slane %v460_v23, 1 }
  0x60   : > { %1855 = vmatmul.msk.bf16.gmra.mxu1 %vm742_vm0, %v676_v26  ;;  %v1157_v26 = vrot.slane %v459_v19, 1 }
  0x62   : > { %v1160_v29 = vsel %vm608_vm4, %v1158_v27, %v1157_v26  ;;  %v1159_v33 = vsel %vm608_vm4, %v1157_v26, %v1158_v27 }
  0x63   : > { %v1166_v34 = vsel %vm1156_vm6, %v1160_v29, 0.0 }
  0x64   : > { %v1240_v38 = vpack.c.bf16 %v1166_v34, %v1159_v33 }
  0x6c   : > { %1840 = vmatmul.msk.bf16.gmra.mxu0 %vm742_vm0, %v1982_v39 }
  0x6f   : > { %1876 = vmatmul.msk.bf16.gmra.mxu2 %vm742_vm0, %v905_v41 }
  0x70   : > { %1856 = vmatmul.msk.bf16.gmra.mxu1 %vm742_vm0, %v677_v40 }
  0x7c   : > { %1841 = vmatmul.msk.bf16.gmra.mxu0 %vm742_vm0, %v1983_v53 }
  0x7f   : > { %1877 = vmatmul.msk.bf16.gmra.mxu2 %vm742_vm0, %v906_v55 }
  0x80   : > { %1857 = vmatmul.msk.bf16.gmra.mxu1 %vm742_vm0, %v678_v54 }
  0x8c   : > { %1842 = vmatmul.msk.bf16.gmra.mxu0 %vm742_vm0, %v1984_v4 }
  0x8f   : > { %1878 = vmatmul.msk.bf16.gmra.mxu2 %vm742_vm0, %v907_v6 }
  0x90   : > { %1858 = vmatmul.msk.bf16.gmra.mxu1 %vm742_vm0, %v679_v5 }
  0x9c   : > { %1843 = vmatmul.msk.bf16.gmra.mxu0 %vm742_vm0, %v1985_v15 }
  0x9f   : > { %1879 = vmatmul.msk.bf16.gmra.mxu2 %vm742_vm0, %v908_v18 }
  0xa0   : > { %1859 = vmatmul.msk.bf16.gmra.mxu1 %vm742_vm0, %v680_v17 }
  0xa9   : > { %v776_v36 = vpop.f32.mrf.mxu0 }
  0xac   : > { %1908 = vmatmul.msk.bf16.vlgmr.msrb.gmra.mxu0 %vm1189_vm7, %v1986_v35 }
  0xad   : > { %v861_v39 = vpop.f32.mrf.mxu1 }
  0xae   : > { %v862_v42 = vadd.f32 %v861_v39, %v776_v36 }
  0xaf   : > { %1918 = vmatmul.msk.bf16.vlgmr.msrb.gmra.mxu2 %vm1189_vm7, %v1240_v38 }
  0xb0   : > { %1913 = vmatmul.msk.bf16.vlgmr.msrb.gmra.mxu1 %vm1189_vm7, %v1167_v37 }
  0xb1   : > { %v778_v41 = vpop.f32.mrf.mxu0 }
  0xb2   : > { %v959_v40 = vpop.f32.mrf.mxu2 }
  0xb3   : > { %v999_v44 = vadd.f32 %v959_v40, %v862_v42 }
  0xb5   : > { %v863_v43 = vpop.f32.mrf.mxu1  ;;  %v1016_v49 = vadd.f32 %v2562_v45, %v999_v44 }
  0xb6   : > { %v864_v46 = vadd.f32 %v863_v43, %v778_v41 }
  0xb7   : > { %v1032_v53 = vmax.f32 %v1016_v49, 0.0 }
  0xb9   : > { %v781_v48 = vpop.f32.mrf.mxu0 }
  0xba   : > { %v961_v47 = vpop.f32.mrf.mxu2 }
  0xbb   : > { %v1000_v50 = vadd.f32 %v961_v47, %v864_v46 }
  0xbd   : > { %v866_v51 = vpop.f32.mrf.mxu1  ;;  %v1017_v52 = vadd.f32 %v2562_v45, %v1000_v50 }
  0xbe   : > { %v867_v58 = vadd.f32 %v866_v51, %v781_v48 }
  0xbf   : > { %v1033_v54 = vmax.f32 %v1017_v52, 0.0 }
  0xc1   : > { %v1048_v55 = vpack.c.bf16 %v1033_v54, %v1032_v53  ;;  %v783_v57 = vpop.f32.mrf.mxu0 }
  0xc2   : > { %v964_v56 = vpop.f32.mrf.mxu2 }
  0xc3   : > { %1892 = vmatmul.msk.bf16.vlgmr.msra.gmra.mxu3 %vm742_vm0, %v1048_v55  ;;  %v1001_v60 = vadd.f32 %v964_v56, %v867_v58 }
  0xc5   : > { %v868_v59 = vpop.f32.mrf.mxu1  ;;  %v1018_v2 = vadd.f32 %v2562_v45, %v1001_v60 }
  0xc6   : > { %v869_v61 = vadd.f32 %v868_v59, %v783_v57 }
  0xc7   : > { %v1034_v6 = vmax.f32 %v1018_v2, 0.0 }
  0xc9   : > { %v786_v63 = vpop.f32.mrf.mxu0 }
  0xca   : > { %v966_v62 = vpop.f32.mrf.mxu2 }
  0xcb   : > { %v1002_v3 = vadd.f32 %v966_v62, %v869_v61 }
  0xcd   : > { %v871_v4 = vpop.f32.mrf.mxu1  ;;  %v1019_v5 = vadd.f32 %v2562_v45, %v1002_v3 }
  0xce   : > { %v872_v13 = vadd.f32 %v871_v4, %v786_v63 }
  0xcf   : > { %v1035_v7 = vmax.f32 %v1019_v5, 0.0 }
  0xd1   : > { %v1049_v8 = vpack.c.bf16 %v1035_v7, %v1034_v6  ;;  %v788_v11 = vpop.f32.mrf.mxu0 }
  0xd2   : > { %v969_v10 = vpop.f32.mrf.mxu2 }
  0xd3   : > { %1893 = vmatmul.msk.bf16.gmra.mxu3 %vm742_vm0, %v1049_v8  ;;  %v1003_v12 = vadd.f32 %v969_v10, %v872_v13 }
  0xd5   : > { %v873_v9 = vpop.f32.mrf.mxu1  ;;  %v1020_v24 = vadd.f32 %v2562_v45, %v1003_v12 }
  0xd6   : > { %v874_v14 = vadd.f32 %v873_v9, %v788_v11 }
  0xd7   : > { %v1036_v23 = vmax.f32 %v1020_v24, 0.0 }
  0xd9   : > { %v791_v16 = vpop.f32.mrf.mxu0 }
  0xda   : > { %v971_v15 = vpop.f32.mrf.mxu2 }
  0xdb   : > { %v1004_v17 = vadd.f32 %v971_v15, %v874_v14 }
  0xdd   : > { %v876_v18 = vpop.f32.mrf.mxu1  ;;  %v1021_v19 = vadd.f32 %v2562_v45, %v1004_v17 }
  0xde   : > { %v877_v27 = vadd.f32 %v876_v18, %v791_v16  ;;  %v1999_v16 = vld [vmem:[%s2760_s5 + $0x8] sm:$0xff] }
  0xdf   : > { %v1037_v20 = vmax.f32 %v1021_v19, 0.0  ;;  %1355 = vmatpush.bf16.msra.mxu0 %v1999_v16 }
  0xe1   : > { %v1050_v21 = vpack.c.bf16 %v1037_v20, %v1036_v23  ;;  %v793_v26 = vpop.f32.mrf.mxu0 }
  0xe2   : > { %v974_v22 = vpop.f32.mrf.mxu2 }
  0xe3   : > { %1894 = vmatmul.msk.bf16.gmra.mxu3 %vm742_vm0, %v1050_v21  ;;  %v1005_v29 = vadd.f32 %v974_v22, %v877_v27  ;;  %v2003_v21 = vld [vmem:[%s2760_s5 + $0x28] sm:$0xff]  ;;  %1356 = vmatpush.bf16.msra.mxu0 %v1998_v30 }
  0xe4   : > { %1390 = vmatpush.bf16.msra.mxu1 %v2003_v21 }
  0xe5   : > { %v878_v28 = vpop.f32.mrf.mxu1  ;;  %v1022_v34 = vadd.f32 %v2562_v45, %v1005_v29 }
  0xe6   : > { %v879_v31 = vadd.f32 %v878_v28, %v793_v26 }
  0xe7   : > { %v1038_v38 = vmax.f32 %v1022_v34, 0.0 }
  0xe9   : > { %v796_v33 = vpop.f32.mrf.mxu0 }
  0xea   : > { %v976_v32 = vpop.f32.mrf.mxu2 }
  0xeb   : > { %v1006_v35 = vadd.f32 %v976_v32, %v879_v31  ;;  %v2002_v31 = vld [vmem:[%s2760_s5 + $0x20] sm:$0xff] }
  0xec   : > { %1391 = vmatpush.bf16.msra.mxu1 %v2002_v31 }
  0xed   : > { %v881_v36 = vpop.f32.mrf.mxu1  ;;  %v1023_v37 = vadd.f32 %v2562_v45, %v1006_v35 }
  0xee   : > { %v882_v43 = vadd.f32 %v881_v36, %v796_v33 }
  0xef   : > { %v1039_v39 = vmax.f32 %v1023_v37, 0.0 }
  0xf1   : > { %v1051_v40 = vpack.c.bf16 %v1039_v39, %v1038_v38  ;;  %v798_v42 = vpop.f32.mrf.mxu0 }
  0xf2   : > { %v979_v41 = vpop.f32.mrf.mxu2 }
  0xf3   : > { %1895 = vmatmul.msk.bf16.gmra.mxu3 %vm742_vm0, %v1051_v40  ;;  %v1007_v46 = vadd.f32 %v979_v41, %v882_v43 }
  0xf5   : > { %v883_v44 = vpop.f32.mrf.mxu1  ;;  %v1024_v50 = vadd.f32 %v2562_v45, %v1007_v46 }
  0xf6   : > { %v884_v47 = vadd.f32 %v883_v44, %v798_v42 }
  0xf7   : > { %v1040_v54 = vmax.f32 %v1024_v50, 0.0 }
  0xf9   : > { %v801_v49 = vpop.f32.mrf.mxu0 }
  0xfa   : > { %v981_v48 = vpop.f32.mrf.mxu2 }
  0xfb   : > { %v1008_v51 = vadd.f32 %v981_v48, %v884_v47 }
  0xfd   : > { %v886_v52 = vpop.f32.mrf.mxu1  ;;  %v1025_v53 = vadd.f32 %v2562_v45, %v1008_v51 }
  0xfe   : > { %v887_v59 = vadd.f32 %v886_v52, %v801_v49  ;;  %v2084_v49 = vld [vmem:[%s2761_s6] ss:$0 sm:$0xff] }
  0xff   : > { %v1041_v55 = vmax.f32 %v1025_v53, 0.0 }
 0x101   : > { %v1052_v56 = vpack.c.bf16 %v1041_v55, %v1040_v54  ;;  %v803_v58 = vpop.f32.mrf.mxu0 }
 0x102   : > { %v984_v57 = vpop.f32.mrf.mxu2 }
 0x103   : > { %1896 = vmatmul.msk.bf16.gmra.mxu3 %vm742_vm0, %v1052_v56  ;;  %v1009_v61 = vadd.f32 %v984_v57, %v887_v59 }
 0x105   : > { %v888_v60 = vpop.f32.mrf.mxu1  ;;  %v1026_v3 = vadd.f32 %v2562_v45, %v1009_v61 }
 0x106   : > { %v889_v62 = vadd.f32 %v888_v60, %v803_v58 }
 0x107   : > { %v1042_v7 = vmax.f32 %v1026_v3, 0.0 }
 0x109   : > { %v806_v2 = vpop.f32.mrf.mxu0 }
 0x10a   : > { %v986_v63 = vpop.f32.mrf.mxu2 }
 0x10b   : > { %v1010_v4 = vadd.f32 %v986_v63, %v889_v62 }
 0x10d   : > { %v891_v5 = vpop.f32.mrf.mxu1  ;;  %v1027_v6 = vadd.f32 %v2562_v45, %v1010_v4 }
 0x10e   : > { %v892_v9 = vadd.f32 %v891_v5, %v806_v2 }
 0x10f   : > { %v1043_v8 = vmax.f32 %v1027_v6, 0.0 }
 0x111   : > { %v1053_v10 = vpack.c.bf16 %v1043_v8, %v1042_v7  ;;  %v808_v13 = vpop.f32.mrf.mxu0 }
 0x112   : > { %v989_v11 = vpop.f32.mrf.mxu2 }
 0x113   : > { %1897 = vmatmul.msk.bf16.gmra.mxu3 %vm742_vm0, %v1053_v10  ;;  %v1011_v14 = vadd.f32 %v989_v11, %v892_v9  ;;  %v2624_v11 = vld [vmem:[%s2758_s3 + $0x1] ss:$0 sm:$0xff] }
 0x115   : > { %v893_v12 = vpop.f32.mrf.mxu1  ;;  %v1028_v18 = vadd.f32 %v2562_v45, %v1011_v14 }
 0x116   : > { %v894_v15 = vadd.f32 %v893_v12, %v808_v13 }
 0x117   : > { %v1044_v22 = vmax.f32 %v1028_v18, 0.0 }
 0x119   : > { %v811_v17 = vpop.f32.mrf.mxu0 }
 0x11a   : > { %v991_v24 = vpop.f32.mrf.mxu2 }
 0x11b   : > { %v1012_v19 = vadd.f32 %v991_v24, %v894_v15 }
 0x11d   : > { %v896_v23 = vpop.f32.mrf.mxu1  ;;  %v1029_v20 = vadd.f32 %v2562_v45, %v1012_v19 }
 0x11e   : > { %v897_v32 = vadd.f32 %v896_v23, %v811_v17 }
 0x11f   : > { %v1045_v26 = vmax.f32 %v1029_v20, 0.0 }
 0x121   : > { %v1054_v27 = vpack.c.bf16 %v1045_v26, %v1044_v22  ;;  %v813_v29 = vpop.f32.mrf.mxu0 }
 0x122   : > { %v994_v28 = vpop.f32.mrf.mxu2 }
 0x123   : > { %1898 = vmatmul.msk.bf16.gmra.mxu3 %vm742_vm0, %v1054_v27  ;;  %v1013_v34 = vadd.f32 %v994_v28, %v897_v32 }
 0x125   : > { %v898_v33 = vpop.f32.mrf.mxu1  ;;  %v1030_v37 = vadd.f32 %v2562_v45, %v1013_v34 }
 0x126   : > { %v899_v35 = vadd.f32 %v898_v33, %v813_v29 }
 0x127   : > { %v1046_v42 = vmax.f32 %v1030_v37, 0.0 }
 0x129   : > { %v1206_v39 = vpop.f32.mrf.mxu0 }
 0x12a   : > { %v996_v36 = vpop.f32.mrf.mxu2 }
 0x12b   : > { %v1014_v38 = vadd.f32 %v996_v36, %v899_v35 }
 0x12d   : > { %v1235_v40 = vpop.f32.mrf.mxu1  ;;  %v1031_v41 = vadd.f32 %v2562_v45, %v1014_v38 }
 0x12e   : > { %v1236_v44 = vadd.f32 %v1235_v40, %v1206_v39 }
 0x12f   : > { %v1047_v43 = vmax.f32 %v1031_v41, 0.0 }
 0x131   : > { %v1055_v46 = vpack.c.bf16 %v1047_v43, %v1046_v42  ;;  %v1208_v50 = vpop.f32.mrf.mxu0 }
 0x132   : > { %v1269_v47 = vpop.f32.mrf.mxu2 }
 0x133   : > { %1899 = vmatmul.msk.bf16.gmra.mxu3 %vm742_vm0, %v1055_v46  ;;  %v1274_v48 = vadd.f32 %v1269_v47, %v1236_v44 }
 0x135   : > { %v1237_v51 = vpop.f32.mrf.mxu1  ;;  %v1277_v52 = vadd.f32 %v2084_v49, %v1274_v48 }
 0x136   : > { %v1238_v53 = vadd.f32 %v1237_v51, %v1208_v50 }
 0x137   : > { %v1279_v56 = vmax.f32 %v1277_v52, 0.0 }
 0x139   : > { %v1282_v58 = vrot.slane %v1279_v56, 7  ;;  %v1288_v59 = vrot.slane %v1279_v56, 1 }
 0x13a   : > { %v1271_v54 = vpop.f32.mrf.mxu2 }
 0x13b   : > { %v1275_v55 = vadd.f32 %v1271_v54, %v1238_v53  ;;  %v2005_v53 = vld [vmem:[%s2760_s5 + $0x38] sm:$0xff] }
 0x13c   : > { %1434 = vmatpush.bf16.msra.mxu2 %v2005_v53 }
 0x13d   : > { %v1278_v45 = vadd.f32 %v2084_v49, %v1275_v55 }
 0x13f   : > { %v1280_v57 = vmax.f32 %v1278_v45, 0.0 }
 0x141   : > { %v1283_v60 = vrot.slane %v1280_v57, 7  ;;  %v1289_v61 = vrot.slane %v1280_v57, 1  ;;  %v1299_v62 = vpack.c.bf16 %v1280_v57, %v1279_v56 }
 0x143   : > { %v1284_v63 = vsel %vm511_vm3, %v1282_v58, %v1283_v60  ;;  %v1285_v2 = vsel %vm511_vm3, %v1283_v60, %v1282_v58  ;;  %v1290_v3 = vsel %vm608_vm4, %v1288_v59, %v1289_v61  ;;  %v1291_v4 = vsel %vm608_vm4, %v1289_v61, %v1288_v59  ;;  %1931 = vmatmul.msk.bf16.vlgmr.msrb.gmra.mxu3 %vm742_vm0, %v1299_v62  ;;  %v2004_v58 = vld [vmem:[%s2760_s5 + $0x30] sm:$0xff] }
 0x144   : > { %v1286_v5 = vsel %vm479_vm1, %v1285_v2, 0.0  ;;  %v1293_v6 = vsel %vm1156_vm6, %v1291_v4, 0.0  ;;  %1435 = vmatpush.bf16.msra.mxu2 %v2004_v58 }
 0x145   : > { %v1294_v7 = vpack.c.bf16 %v1284_v63, %v1286_v5  ;;  %v1363_v8 = vpack.c.bf16 %v1293_v6, %v1290_v3 }
 0x146   : > { %v1108_v10 = vpop.f32.mrf.mxu3 }
 0x147   : > { %1940 = vmatmul.msk.bf16.vlgmr.msra.gmra.mxu0 %vm742_vm0, %v1294_v7  ;;  %1953 = vmatmul.msk.bf16.vlgmr.msra.gmra.mxu1 %vm742_vm0, %v1363_v8  ;;  %v1109_v9 = vadd.f32 %v2624_v11, %v1108_v10 }
 0x14e   : > { %v1110_v13 = vpop.f32.mrf.mxu3 }
 0x14f   : > { %v1111_v1 = vadd.f32 %v2624_v11, %v1110_v13  ;;  %v2086_v13 = vld [vmem:[%s2761_s6 + $0x1] ss:$0 sm:$0xff] }
 0x151   : > { %v1460_v12 = vpack.c.bf16 %v1111_v1, %v1109_v9 }
 0x153   : > { %v1468_v25 = vunpack.c.l.bf16 %v1460_v12  ;;  %v1469_v15 = vunpack.c.h.bf16 %v1460_v12 }
 0x155   : > { %1484 = vxpose.xlu1.b32.start [1/16] (narrow) %v1468_v25, 32 }
 0x156   : > { %v1113_v14 = vpop.f32.mrf.mxu3 }
 0x157   : > { %v1114_v24 = vadd.f32 %v2624_v11, %v1113_v14 }
 0x15d   : > { %1485 = vxpose.xlu1.b32.cont [2/16] (narrow) %v1469_v15, 32 }
 0x15e   : > { %v1115_v16 = vpop.f32.mrf.mxu3 }
 0x15f   : > { %v1116_v17 = vadd.f32 %v2624_v11, %v1115_v16 }
 0x161   : > { %v1461_v18 = vpack.c.bf16 %v1116_v17, %v1114_v24 }
 0x163   : > { %v1470_v19 = vunpack.c.l.bf16 %v1461_v18  ;;  %v1471_v20 = vunpack.c.h.bf16 %v1461_v18 }
 0x165   : > { %1486 = vxpose.xlu1.b32.cont [3/16] (narrow) %v1470_v19, 32 }
 0x166   : > { %v1118_v23 = vpop.f32.mrf.mxu3 }
 0x167   : > { %v1119_v22 = vadd.f32 %v2624_v11, %v1118_v23 }
 0x16d   : > { %1487 = vxpose.xlu1.b32.cont [4/16] (narrow) %v1471_v20, 32 }
 0x16e   : > { %v1120_v21 = vpop.f32.mrf.mxu3 }
 0x16f   : > { %v1121_v26 = vadd.f32 %v2624_v11, %v1120_v21  ;;  %v2087_v21 = vld [vmem:[%s2761_s6 + $0x2] ss:$0 sm:$0xff] }
 0x171   : > { %v1462_v27 = vpack.c.bf16 %v1121_v26, %v1119_v22 }
 0x173   : > { %v1472_v28 = vunpack.c.l.bf16 %v1462_v27  ;;  %v1473_v30 = vunpack.c.h.bf16 %v1462_v27 }
 0x175   : > { %1488 = vxpose.xlu1.b32.cont [5/16] (narrow) %v1472_v28, 32 }
 0x176   : > { %v1123_v29 = vpop.f32.mrf.mxu3 }
 0x177   : > { %v1124_v32 = vadd.f32 %v2624_v11, %v1123_v29 }
 0x17d   : > { %1489 = vxpose.xlu1.b32.cont [6/16] (narrow) %v1473_v30, 32 }
 0x17e   : > { %v1125_v31 = vpop.f32.mrf.mxu3 }
 0x17f   : > { %v1126_v33 = vadd.f32 %v2624_v11, %v1125_v31 }
 0x181   : > { %v1463_v34 = vpack.c.bf16 %v1126_v33, %v1124_v32 }
 0x183   : > { %v1474_v35 = vunpack.c.l.bf16 %v1463_v34  ;;  %v1475_v37 = vunpack.c.h.bf16 %v1463_v34 }
 0x185   : > { %1490 = vxpose.xlu1.b32.cont [7/16] (narrow) %v1474_v35, 32 }
 0x186   : > { %v1128_v36 = vpop.f32.mrf.mxu3 }
 0x187   : > { %v1129_v39 = vadd.f32 %v2624_v11, %v1128_v36 }
 0x18d   : > { %1491 = vxpose.xlu1.b32.cont [8/16] (narrow) %v1475_v37, 32 }
 0x18e   : > { %v1130_v38 = vpop.f32.mrf.mxu3 }
 0x18f   : > { %v1131_v40 = vadd.f32 %v2624_v11, %v1130_v38 }
 0x191   : > { %v1464_v41 = vpack.c.bf16 %v1131_v40, %v1129_v39 }
 0x193   : > { %v1476_v42 = vunpack.c.l.bf16 %v1464_v41  ;;  %v1477_v44 = vunpack.c.h.bf16 %v1464_v41 }
 0x195   : > { %1492 = vxpose.xlu1.b32.cont [9/16] (narrow) %v1476_v42, 32 }
 0x196   : > { %v1133_v43 = vpop.f32.mrf.mxu3 }
 0x197   : > { %v1134_v47 = vadd.f32 %v2624_v11, %v1133_v43 }
 0x19d   : > { %1493 = vxpose.xlu1.b32.cont [10/16] (narrow) %v1477_v44, 32 }
 0x19e   : > { %v1135_v46 = vpop.f32.mrf.mxu3 }
 0x19f   : > { %v1136_v48 = vadd.f32 %v2624_v11, %v1135_v46 }
 0x1a1   : > { %v1465_v49 = vpack.c.bf16 %v1136_v48, %v1134_v47 }
 0x1a3   : > { %v1478_v50 = vunpack.c.l.bf16 %v1465_v49  ;;  %v1479_v52 = vunpack.c.h.bf16 %v1465_v49 }
 0x1a5   : > { %1494 = vxpose.xlu1.b32.cont [11/16] (narrow) %v1478_v50, 32 }
 0x1a6   : > { %v1138_v51 = vpop.f32.mrf.mxu3 }
 0x1a7   : > { %v1139_v55 = vadd.f32 %v2624_v11, %v1138_v51 }
 0x1ad   : > { %1495 = vxpose.xlu1.b32.cont [12/16] (narrow) %v1479_v52, 32 }
 0x1ae   : > { %v1140_v54 = vpop.f32.mrf.mxu3 }
 0x1af   : > { %v1141_v56 = vadd.f32 %v2624_v11, %v1140_v54 }
 0x1b1   : > { %v1466_v45 = vpack.c.bf16 %v1141_v56, %v1139_v55 }
 0x1b3   : > { %v1480_v57 = vunpack.c.l.bf16 %v1466_v45  ;;  %v1481_v60 = vunpack.c.h.bf16 %v1466_v45 }
 0x1b5   : > { %1496 = vxpose.xlu1.b32.cont [13/16] (narrow) %v1480_v57, 32 }
 0x1b6   : > { %v1143_v59 = vpop.f32.mrf.mxu3 }
 0x1b7   : > { %v1144_v62 = vadd.f32 %v2624_v11, %v1143_v59 }
 0x1bd   : > { %1497 = vxpose.xlu1.b32.cont [14/16] (narrow) %v1481_v60, 32 }
 0x1be   : > { %v1145_v61 = vpop.f32.mrf.mxu3 }
 0x1bf   : > { %v1146_v63 = vadd.f32 %v2624_v11, %v1145_v61 }
 0x1c1   : > { %v1467_v2 = vpack.c.bf16 %v1146_v63, %v1144_v62 }
 0x1c3   : > { %v1482_v3 = vunpack.c.l.bf16 %v1467_v2  ;;  %v1483_v8 = vunpack.c.h.bf16 %v1467_v2 }
 0x1c4   : > { %v1358_v4 = vpop.f32.mrf.mxu0  ;;  %v1393_v5 = vpop.f32.mrf.mxu1 }
 0x1c5   : > { %1498 = vxpose.xlu1.b32.cont [15/16] (narrow) %v1482_v3, 32 }
 0x1c6   : > { %v1329_v6 = vpop.f32.mrf.mxu3 }
 0x1c7   : > { %v1359_v7 = vadd.f32 %v1358_v4, %v1329_v6 }
 0x1c9   : > { %v1398_v10 = vadd.f32 %v1393_v5, %v1359_v7 }
 0x1cb   : > { %v1401_v11 = vadd.f32 %v2086_v13, %v1398_v10 }
 0x1cc   : > { %v1360_v9 = vpop.f32.mrf.mxu0  ;;  %v1395_v25 = vpop.f32.mrf.mxu1 }
 0x1cd   : > { %1499 = vxpose.xlu1.b32.end [16/16] (narrow) %v1483_v8, 32  ;;  %v1403_v16 = vmax.f32 %v1401_v11, 0.0 }
 0x1ce   : > { %v1331_v1 = vpop.f32.mrf.mxu3 }
 0x1cf   : > { %v1361_v12 = vadd.f32 %v1360_v9, %v1331_v1 }
 0x1d1   : > { %v1399_v14 = vadd.f32 %v1395_v25, %v1361_v12 }
 0x1d3   : > { %v1402_v15 = vadd.f32 %v2086_v13, %v1399_v14 }
 0x1d5   : > { %v1404_v24 = vmax.f32 %v1402_v15, 0.0 }
 0x1d7   : > { %v1405_v17 = vpack.c.bf16 %v1404_v24, %v1403_v16 }
 0x1d9   : > { %1966 = vmatmul.msk.bf16.vlgmr.msra.gmra.mxu2 %vm742_vm0, %v1405_v17 }
 0x1f9   : > { %v1500_v18 = vpop.trf.xlu1 }
 0x1fa   : > { %v1516_v19 = vmul.f32 2.0, %v1500_v18 }
 0x201   : > { %v1501_v23 = vpop.trf.xlu1 }
 0x202   : > { %v1517_v20 = vmul.f32 2.0, %v1501_v23 }
 0x204   : > { %v2011_v22 = vpack.c.bf16 %v1517_v20, %v1516_v19 }
 0x206   : > { %2012 = vst [vmem:[%s388_s18] sm:$0xff] %v2011_v22  }
 0x209   : > { %v1502_v28 = vpop.trf.xlu1 }
 0x20a   : > { %v1518_v35 = vmul.f32 2.0, %v1502_v28 }
 0x211   : > { %v1503_v36 = vpop.trf.xlu1 }
 0x212   : > { %v1519_v38 = vmul.f32 2.0, %v1503_v36 }
 0x214   : > { %v2016_v40 = vpack.c.bf16 %v1519_v38, %v1518_v35 }
 0x216   : > { %2018 = vst [vmem:[%s388_s18 + $0x8] sm:$0xff] %v2016_v40  }
 0x25c   : > { %v1437_v26 = vpop.f32.mrf.mxu2 }
 0x25d   : > { %v1438_v27 = vadd.f32 %v2087_v21, %v1437_v26 }
 0x25f   : > { %v1442_v29 = vpack.c.bf16 %v1438_v27, %v1438_v27 }
 0x261   : > { %1445 = vst.msk [vmem:[%s2661_s28] sm:$0xf] %vm1444_vm8, %v1442_v29  ;;  %v1447_v30 = vunpack.c.l.bf16 %v1442_v29 }
 0x263   : > { %v1449_v31 = vmul.f32 %v1447_v30, %v1447_v30 }
 0x264   : > { %v1439_v32 = vpop.f32.mrf.mxu2 }
 0x265   : > { %v1440_v33 = vadd.f32 %v2087_v21, %v1439_v32  ;;  %v1451_v34 = vsel %vm742_vm0, %v1449_v31, 0.0 }
 0x266   : > { %1452 = vadd.xlane.f32.xlu0 %v1451_v34 }
 0x267   : > { %v1443_v37 = vpack.c.bf16 %v1440_v33, %v1440_v33 }
 0x269   : > { %1446 = vst.msk [vmem:[%s2661_s28 + $0x4] sm:$0xf] %vm1444_vm8, %v1443_v37  ;;  %v1448_v39 = vunpack.c.l.bf16 %v1443_v37 }
 0x26b   : > { %v1450_v41 = vmul.f32 %v1448_v39, %v1448_v39 }
 0x26c   : > { %2145 = shalt.err (!%p2142_p8)
}
 0x26d   : > { %s2767_s18 = smov 64   ;;  %s2768_s1 = smov 4   ;;  %v1454_v42 = vsel %vm742_vm0, %v1450_v41, 0.0  ;;  %v1528_v43 = vmul.f32 %v1500_v18, %v1500_v18  ;;  %v1529_v44 = vmul.f32 %v1501_v23, %v1501_v23  ;;  %v1530_v47 = vmul.f32 %v1502_v28, %v1502_v28 }
 0x26e   : > { %2023 = dma.vmem_to_hbm [thread:$0]  (%p2346_p5), %s1574_s20, 256, %s1576_s21, %s1547_s25, %s2767_s18, %s2767_s18, %s2768_s1   ;;  %1455 = vadd.xlane.f32.xlu0 %v1454_v42  ;;  %v1531_v49 = vmul.f32 %v1503_v36, %v1503_v36  ;;  %v1542_v45 = vand.u32 127, %v461_v0 }
 0x26f   : > { %v1532_v46 = vadd.f32 %v1529_v44, %v1528_v43  ;;  %s2007_s0 = sshll.u32 %s2327_s17, 3  ;;  %s1587_s25 = scalar_lea.hbm %s2763_s8, %s2327_s17 }
 0x270   : > { %s1602_s22 = scalar_lea.hbm %s2764_s9, %s2007_s0  ;;  %s1551_s29 = sand.u32 1, %s2327_s17   ;;  %vm1543_vm9 = vcmp.lt.s32.totalorder %v1542_v45, 8 }
 0x271   : > { %v1533_v48 = vadd.f32 %v1532_v46, %v1530_v47  ;;  %s394_s30 = scalar_lea.vmem [#allocation6], %s2653_s26  ;;  %s1591_s18 = sshll.u32 %s1587_s25, 4  ;;  %s1592_s18 = int_to_ptr.hbm [resolvable:$true] %s1591_s18 }
 0x272   : > { %s1589_s11 = sshll.u32 %s394_s30, 4  ;;  %s1603_s1 = sshll.u32 %s2661_s28, 4  ;;  %s1590_s11 = int_to_ptr.vmem [resolvable:$true] %s1589_s11  ;;  %s2698_s1 = int_to_ptr.vmem [resolvable:$true] %s1603_s1 }
 0x273   : > { %v1534_v50 = vadd.f32 %v1533_v48, %v1531_v49  ;;  %s1605_s2 = sshll.u32 %s1602_s22, 4  ;;  %s2702_s0 = scalar_lea.sflag [#allocation7], %s1551_s29  ;;  %s2700_s2 = int_to_ptr.hbm [resolvable:$true] %s1605_s2 }
 0x274   : > { %s2160_s17 = sshra.s32 %s1592_s18, 4  ;;  %s2166_s21 = scalar_lea.hbm %s2763_s8, 2  ;;  %s2161_s17 = int_to_ptr.hbm [resolvable:$true] %s2160_s17 }
 0x275   : > { %v1535_v51 = vrot.slane %v1534_v50, 4  ;;  %s2162_s26 = scalar_lea.hbm %s2161_s17, 1  ;;  %p2167_p12 = scmp.lt.s32.totalorder %s2161_s17, %s2763_s8 }
 0x276   : > { %p2163_p9 = scmp.ne.s32.totalorder %s2161_s17, %s2162_s26  ;;  %p2168_p13 = scmp.lt.s32.totalorder %s2166_s21, %s2162_s26 }
 0x277   : > { %v1536_v52 = vadd.f32 %v1535_v51, %v1534_v50 }
 0x278   : > { %p2164_p10 = pnand %p2163_p9, %p2346_p5  ;;  %p2169_p0 = por %p2168_p13, %p2167_p12 }
 0x279   : > { %v1537_v53 = vrot.slane %v1536_v52, 2 }
 0x27a   : > { %p2165_p11 = pneg %p2164_p10 }
 0x27b   : > { %v1538_v54 = vadd.f32 %v1537_v53, %v1536_v52 }
 0x27c   : > { %p2170_p1 = pnand %p2169_p0, %p2165_p11 }
 0x27d   : > { %v1539_v55 = vrot.slane %v1538_v54, 1 }
 0x27f   : > { %v1540_v56 = vadd.f32 %v1539_v55, %v1538_v54 }
 0x281   : > { %v1544_v57 = vsel %vm1543_vm9, %v1540_v56, 1e+30 }
 0x282   : > { %1545 = vst [vmem:[%s394_s30] sm:$0x1] %v1544_v57 }
 0x283   : > { %2173 = shalt.err (!%p2170_p1)
}
 0x284   : > { %2024 = dma.vmem_to_hbm [thread:$0]  (%p2346_p5), %s1590_s11, 16, %s1592_s18, %s2702_s0  }
 0x285   : > { %s2188_s4 = sshra.s32 %s2700_s2, 4  ;;  %s2194_s17 = scalar_lea.hbm %s2764_s9, 16  ;;  %s2189_s4 = int_to_ptr.hbm [resolvable:$true] %s2188_s4 }
 0x286   : > { %s2190_s22 = scalar_lea.hbm %s2189_s4, 8  ;;  %p2195_p7 = scmp.lt.s32.totalorder %s2189_s4, %s2764_s9 }
 0x287   : > { %p2191_p2 = scmp.ne.s32.totalorder %s2189_s4, %s2190_s22  ;;  %p2196_p8 = scmp.lt.s32.totalorder %s2194_s17, %s2190_s22 }
 0x289   : > { %p2192_p3 = pnand %p2191_p2, %p2346_p5  ;;  %p2197_p9 = por %p2196_p8, %p2195_p7 }
 0x28b   : > { %p2193_p4 = pneg %p2192_p3 }
 0x28d   : > { %p2198_p10 = pnand %p2197_p9, %p2193_p4 }
 0x28f   : > { %2201 = shalt.err (!%p2198_p10)
}
 0x290   : > { %s2780_s18 = smov 4   ;;  %s2781_s11 = smov 64   ;;  %vm1457_vm10 = vcmask 7168  }
 0x291   : > { %2025 = dma.vmem_to_hbm [thread:$0]  (%p2346_p5), %s2698_s1, 128, %s2700_s2, %s2702_s0, %s2781_s11, %s2781_s11, %s2780_s18  }
 0x292   : > { %s1977_s20 = sshll.u32 %s2368_s12, 4 }
 0x293   : > { %s423_s27 = scalar_lea.vmem %s2765_s10, %s1977_s20 }
 0x2d9   : > { %v1453_v0 = vpop.xlane.xlu0 %1452 }
 0x2da   : > { %1458 = vst.msk [vmem:[%s423_s27] sm:$0xff] %vm1457_vm10, %v1453_v0 }
 0x2e1   : > { %v1456_v58 = vpop.xlane.xlu0 %1455 }
 0x2e2   : > { %1459 = vst.msk [vmem:[%s423_s27 + $0x8] sm:$0xff] %vm1457_vm10, %v1456_v58 }
 0x2e3 PF: > { %p2045_p11 = scmp.ge.s32.totalorder %s2244_s16, 2  ;;  %s1623_s23 = sand.u32 1, %s2232_s13  }
 0x2e4   : > { %s1624_s1 = scalar_lea.sflag [#allocation4], %s1623_s23 }
 0x2e5   : > { %p2034_p12 = pnand %p2045_p11, %p2350_p6 }
 0x2e7   : > { %p2035_p13 = pneg %p2034_p12 }
 0x2e9   : > { %2223 = dma.done.wait (%p2035_p13), %s1624_s1, 256  }
 0x2ea   : > { %2225 = vsyncadd (%p2035_p13), %s1624_s1, 4294967040  ;;  %s2782_s2 = sadd.s32 4294967294, %s2244_s16  }
 0x2eb   : > { %s1633_s12 = sand.u32 1, %s2782_s2  }
 0x2ec   : > { %s1634_s0 = scalar_lea.sflag [#allocation7], %s1633_s12 }
 0x2ed   : > { %2227 = dma.done.wait (%p2035_p13), %s1634_s0, 144  }
 0x2ee   : > { %2229 = vsyncadd (%p2035_p13), %s1634_s0, 4294967152  ;;  %s2783_s4 = sld [smem:[#allocation12_spill]]  ;;  %p25_p5 = scmp.ge.s32.totalorder %s2331_s19, 4  }
 0x2ef   : > { %s2784_s13 = smov %s2236_s14  ;;  %s2785_s14 = smov %s2240_s15 }
 0x2f0   : > { %s2787_s16 = smov %s2331_s19  ;;  %27 = sbr.rel (!%p25_p5) target bundleno = 11 (0xb), region = 143 }
 0x2f4   : > { %s2786_s15 = smov %s2783_s4 }
 0x2f5   :  { %1657 = vsyncpa [#allocation3], 1 }
 0x2f6   :  { %1659 = vsyncpa [#allocation3 + $0x1], 1 }
 0x2f7   :  { %1660 = vsyncpa [#allocation4], 1 }
 0x2f8   :  { %1662 = vsyncpa [#allocation4 + $0x1], 1 }
 0x2f9   :  { %1663 = vsyncpa [#allocation7], 1 }
 0x2fa   :  { %1665 = vsyncpa [#allocation7 + $0x1], 1 }

</bundles_post_ra>
